<compile_context>
chip_gen: v5e
topology: v5e:2x2
jax: 0.10.0
libtpu: 0.0.40
codegen_flags: <defaults>
</compile_context>

<pallas_src>
import functools

import jax
import jax.numpy as jnp
from jax.experimental import pallas as pl
from jax.experimental.pallas import tpu as pltpu


# ----------------------------- small config --------------------------------
class Config:
    vocab_size = 128          # (30522 in the real model; shrunk for the demo)
    block_size = 16           # (512)
    embedding_dim = 32        # (768)
    n_layer = 2               # (12)
    n_heads = 4               # (12)
    token_type_embedding = 2
    num_of_expert_per_token = 2
    total_number_of_experts = 6
    expert_hidden = 4 * 32    # BERT-style 4x intermediate


cfg = Config()
LN_EPS = 1e-12
NEG_INF = -1e30
VMEM_LIMIT = 48 * 1024 * 1024    # raise scoped VMEM limit (safe on v5e/v6e/v7x)


def _round_up(a, m):
    return (a + m - 1) // m * m


# --------------------------- in-kernel helpers ------------------------------
def _layernorm(x, g, b):
    # x: (..., C) f32; g, b: (1, C) f32
    mean = jnp.mean(x, axis=-1, keepdims=True)
    var = jnp.mean((x - mean) ** 2, axis=-1, keepdims=True)
    return (x - mean) * jax.lax.rsqrt(var + LN_EPS) * g + b


def _softmax_last(x):
    # f32 statistics; reciprocal on the EUP slot (approx) for the denominator.
    x = x - jnp.max(x, axis=-1, keepdims=True)
    e = jnp.exp(x)
    return e * pl.reciprocal(jnp.sum(e, axis=-1, keepdims=True), approx=True)


# ------------------------------ Pallas kernels ------------------------------
def encoder_kernel(
    tok_ref, pos_ref, typ_ref, emb_g_ref, emb_b_ref,          # embedding
    wqkv_ref, bqkv_ref, wo_ref, bo_ref, ln1_g_ref, ln1_b_ref,  # attention
    gate_w_ref, gate_b_ref,                                    # MoE gate
    ew1_ref, eb1_ref, ew2_ref, eb2_ref,                        # MoE experts
    wd_ref, bd_ref, ln2_g_ref, ln2_b_ref,                      # output proj
    out_ref,                                                   # (1, T, C) bf16
    h_ref,                                                     # VMEM (T, C) f32
):
    """Embedding LN + all encoder layers.  grid = (batch tile, layer)."""
    l = pl.program_id(1)
    n_layers = pl.num_programs(1)

    # Layer 0 of each batch tile: embedding sum + LayerNorm into the carry.
    @pl.when(l == 0)
    def _():
        x0 = (tok_ref[0].astype(jnp.float32)
              + pos_ref[...].astype(jnp.float32)
              + typ_ref[0].astype(jnp.float32))                 # (T, C) f32
        h_ref[...] = _layernorm(x0, emb_g_ref[...], emb_b_ref[...])

    x = h_ref[...]                                              # (T, C) f32
    T, C = x.shape
    H = cfg.n_heads
    hd = C // H
    E = cfg.total_number_of_experts

    xb = x.astype(jnp.bfloat16)

    # ---- self attention: fused QKV, leading-head batched contractions -----
    # wqkv layout: [q-heads(0:H) | k-heads(H:2H) | v-heads(2H:3H)] on axis 0.
    xg = jnp.broadcast_to(xb, (3 * H, T, C))
    qkv = (jnp.einsum('gtc,gcd->gtd', xg, wqkv_ref[0],
                      preferred_element_type=jnp.float32)
           + bqkv_ref[0])                                       # (3H, T, hd)
    qh = qkv[:H]
    kh = qkv[H:2 * H]
    vh = qkv[2 * H:]

    inv_sqrt_d = 1.0 / (float(hd) ** 0.5)
    scores = jnp.einsum('hqd,hkd->hqk',
                        qh.astype(jnp.bfloat16), kh.astype(jnp.bfloat16),
                        preferred_element_type=jnp.float32) * inv_sqrt_d
    probs = _softmax_last(scores)                               # (H, T, T) f32
    ctx = jnp.einsum('hqk,hkd->hqd',
                     probs.astype(jnp.bfloat16), vh.astype(jnp.bfloat16),
                     preferred_element_type=jnp.float32)        # (H, T, hd)

    # output dense: concat-over-heads folded into per-head matmul + sum
    heads_out = jnp.einsum('hqd,hdc->hqc',
                           ctx.astype(jnp.bfloat16), wo_ref[0],
                           preferred_element_type=jnp.float32)  # (H, T, C)
    attn_out = jnp.sum(heads_out, axis=0) + bo_ref[0]           # (T, C)

    # residual (as in the PyTorch reference): x = x + LayerNorm(dense(out))
    x2 = x + _layernorm(attn_out, ln1_g_ref[0], ln1_b_ref[0])

    # ---- MoE: top-2 of E experts, softmax over the two selected logits ----
    x2b = x2.astype(jnp.bfloat16)
    gate_logits = (jnp.dot(x2b, gate_w_ref[0],
                           preferred_element_type=jnp.float32)
                   + gate_b_ref[0])                             # (T, E)
    iota = jax.lax.broadcasted_iota(jnp.int32, gate_logits.shape, 1)

    m1 = jnp.max(gate_logits, axis=-1, keepdims=True)
    idx1 = jnp.min(jnp.where(gate_logits == m1, iota, E), axis=-1, keepdims=True)
    mask1 = iota == idx1
    masked = jnp.where(mask1, NEG_INF, gate_logits)
    m2 = jnp.max(masked, axis=-1, keepdims=True)
    idx2 = jnp.min(jnp.where(masked == m2, iota, E), axis=-1, keepdims=True)
    mask2 = iota == idx2

    w2 = jax.nn.sigmoid(m2 - m1)                                # softmax({m1,m2})
    w1 = 1.0 - w2
    route_w = (w1 * mask1.astype(jnp.float32)
               + w2 * mask2.astype(jnp.float32))                # (T, E)

    # TODO(synk): dense compute over all experts (masked by route_w) is ~3x the
    #             FLOPs of a routed top-2 grouped matmul.
    xe = jnp.broadcast_to(x2b, (E, T, C))
    h1 = jax.nn.gelu(
        jnp.einsum('etc,ech->eth', xe, ew1_ref[0],
                   preferred_element_type=jnp.float32) + eb1_ref[0])   # (E,T,Hh)
    ye = (jnp.einsum('eth,ehc->etc', h1.astype(jnp.bfloat16), ew2_ref[0],
                     preferred_element_type=jnp.float32) + eb2_ref[0])  # (E,T,C)

    moe_out = jnp.zeros_like(x2)
    for e in range(E):                                          # static unroll
        moe_out = moe_out + route_w[:, e:e + 1] * ye[e]

    # ---- output projection + second residual/LN ---------------------------
    dense_out = (jnp.dot(moe_out.astype(jnp.bfloat16), wd_ref[0],
                         preferred_element_type=jnp.float32) + bd_ref[0])
    x3 = x2 + _layernorm(dense_out, ln2_g_ref[0], ln2_b_ref[0])

    h_ref[...] = x3                                             # carry to l+1

    @pl.when(l == n_layers - 1)
    def _():
        out_ref[0] = x3.astype(out_ref.dtype)


def classifier_kernel(x_ref, w_ref, b_ref, o_ref):
    """(Tt, C) bf16 @ (C, Vt) bf16 -> (Tt, Vt) f32 logits tile."""
    o_ref[...] = (jnp.dot(x_ref[...], w_ref[...],
                          preferred_element_type=jnp.float32) + b_ref[...])


# ------------------------------ wrappers ------------------------------------
LAYER_PARAM_ORDER = (
    'wqkv', 'bqkv', 'wo', 'bo', 'ln1_g', 'ln1_b',
    'gate_w', 'gate_b',
    'ew1', 'eb1', 'ew2', 'eb2',
    'wd', 'bd', 'ln2_g', 'ln2_b',
)


def encoder_stack(tok, pos, typ, emb_g, emb_b, sp):
    """Embedding LN + all encoder layers in one pallas_call (grid = B x L)."""
    B, T, C = tok.shape
    L = sp['wqkv'].shape[0]
    args = [sp[name] for name in LAYER_PARAM_ORDER]

    in_specs = [
        pl.BlockSpec((1, T, C), lambda b, l: (b, 0, 0)),   # tok (per batch)
        pl.BlockSpec((T, C), lambda b, l: (0, 0)),         # pos (shared)
        pl.BlockSpec((1, T, C), lambda b, l: (b, 0, 0)),   # typ (per batch)
        pl.BlockSpec((1, C), lambda b, l: (0, 0)),         # emb LN gamma
        pl.BlockSpec((1, C), lambda b, l: (0, 0)),         # emb LN beta
    ]
    for a in args:                                         # layer-stacked params
        zeros = (0,) * (a.ndim - 1)
        in_specs.append(
            pl.BlockSpec((1,) + a.shape[1:],
                         lambda b, l, _z=zeros: (l,) + _z))

    return pl.pallas_call(
        encoder_kernel,
        out_shape=jax.ShapeDtypeStruct((B, T, C), jnp.bfloat16),
        grid_spec=pltpu.PrefetchScalarGridSpec(
            num_scalar_prefetch=0,
            grid=(B, L),                            # layer axis innermost
            in_specs=in_specs,
            out_specs=pl.BlockSpec((1, T, C), lambda b, l: (b, 0, 0)),
            scratch_shapes=[pltpu.VMEM((T, C), jnp.float32)]),
        compiler_params=pltpu.CompilerParams(
            dimension_semantics=("parallel", "arbitrary"),
            vmem_limit_bytes=VMEM_LIMIT),
    )(tok, pos, typ, emb_g, emb_b, *args)


def classifier(x, w, b):
    """Vocab-tiled classifier; returns (B, T, Vp) f32 (caller slices to V)."""
    B, T, C = x.shape
    Vp = w.shape[1]
    N = B * T

    Tt = min(256, _round_up(N, 8))
    Np = _round_up(N, Tt)
    xf = x.reshape(N, C)
    if Np != N:
        xf = jnp.pad(xf, ((0, Np - N), (0, 0)))

    Vt = 128
    for cand in (512, 256, 128):
        if Vp % cand == 0:
            Vt = cand
            break

    out = pl.pallas_call(
        classifier_kernel,
        out_shape=jax.ShapeDtypeStruct((Np, Vp), jnp.float32),
        grid_spec=pltpu.PrefetchScalarGridSpec(
            num_scalar_prefetch=0,
            grid=(Np // Tt, Vp // Vt),
            in_specs=[pl.BlockSpec((Tt, C), lambda t, v: (t, 0)),
                      pl.BlockSpec((C, Vt), lambda t, v: (0, v)),
                      pl.BlockSpec((1, Vt), lambda t, v: (0, v))],
            out_specs=pl.BlockSpec((Tt, Vt), lambda t, v: (t, v))),
        compiler_params=pltpu.CompilerParams(
            dimension_semantics=("parallel", "parallel"),
            vmem_limit_bytes=VMEM_LIMIT),
    )(xf, w, b)
    return out[:N].reshape(B, T, Vp)


# --------------------------- parameter init ---------------------------------
def init_params(key):
    C = cfg.embedding_dim
    V = cfg.vocab_size
    Vp = _round_up(V, 128)
    E = cfg.total_number_of_experts
    Hh = cfg.expert_hidden
    H = cfg.n_heads
    hd = C // H
    L = cfg.n_layer
    scale = 0.02

    keys = iter(jax.random.split(key, 32))

    def nrm(shape):
        return (scale * jax.random.normal(next(keys), shape,
                                          dtype=jnp.float32)).astype(jnp.bfloat16)

    params = {
        'word_emb': nrm((V, C)).at[0].set(0.0),        # padding_idx = 0
        'pos_emb': nrm((cfg.block_size, C)),
        'type_emb': nrm((cfg.token_type_embedding, C)),
        'emb_ln_g': jnp.ones((1, C), jnp.float32),
        'emb_ln_b': jnp.zeros((1, C), jnp.float32),
        'cls_w': jnp.zeros((C, Vp), jnp.bfloat16).at[:, :V].set(nrm((C, V))),
        'cls_b': jnp.zeros((1, Vp), jnp.float32),
        'stacked': {
            # QKV fused: axis 1 = [q-heads | k-heads | v-heads] -> one batched
            # matmul per layer; output dense stored per head for the same reason.
            'wqkv': nrm((L, 3 * H, C, hd)),
            'bqkv': jnp.zeros((L, 3 * H, 1, hd), jnp.float32),
            'wo': nrm((L, H, hd, C)),
            'bo': jnp.zeros((L, 1, C), jnp.float32),
            'ln1_g': jnp.ones((L, 1, C), jnp.float32),
            'ln1_b': jnp.zeros((L, 1, C), jnp.float32),
            'gate_w': nrm((L, C, E)),
            'gate_b': jnp.zeros((L, 1, E), jnp.float32),
            'ew1': nrm((L, E, C, Hh)),
            'eb1': jnp.zeros((L, E, 1, Hh), jnp.float32),
            'ew2': nrm((L, E, Hh, C)),
            'eb2': jnp.zeros((L, E, 1, C), jnp.float32),
            'wd': nrm((L, C, C)),
            'bd': jnp.zeros((L, 1, C), jnp.float32),
            'ln2_g': jnp.ones((L, 1, C), jnp.float32),
            'ln2_b': jnp.zeros((L, 1, C), jnp.float32),
        },
    }
    return params


# ------------------------------- forward ------------------------------------
def bert_moe_forward(params, input_ids, token_type_ids, labels=None):
    """Equivalent of BertForSequenceClassificationMOE.forward (type='masked')."""
    B, T = input_ids.shape
    V = cfg.vocab_size

    # embedding gathers are glue (irregular gathers); hot path stays in Pallas
    tok = jnp.take(params['word_emb'], input_ids, axis=0)        # (B,T,C) bf16
    typ = jnp.take(params['type_emb'], token_type_ids, axis=0)   # (B,T,C) bf16
    pos = params['pos_emb'][:T]                                  # (T,C) bf16

    x = encoder_stack(tok, pos, typ,
                      params['emb_ln_g'], params['emb_ln_b'],
                      params['stacked'])                         # (B,T,C) bf16

    logits = classifier(x, params['cls_w'], params['cls_b'])[..., :V]  # f32

    loss = None
    if labels is not None:
        # TODO(synk): CE loss left in plain JAX (tiny reduction; XLA fuses it).
        logp = jax.nn.log_softmax(logits.reshape(-1, V), axis=-1)
        picked = jnp.take_along_axis(logp, labels.reshape(-1, 1), axis=-1)
        loss = -jnp.mean(picked)                                 # CE, mean
    return {'loss': loss, 'logits': logits}


# --------------------------------- main --------------------------------------
if __name__ == "__main__":
    root = jax.random.PRNGKey(0)
    kparam, kx, kt, kl = jax.random.split(root, 4)

    params = init_params(kparam)

    B, T = 2, 8
    input_ids = jax.random.randint(kx, (B, T), 0, cfg.vocab_size, dtype=jnp.int32)
    token_type_ids = jax.random.randint(kt, (B, T), 0,
                                        cfg.token_type_embedding, dtype=jnp.int32)
    labels = jax.random.randint(kl, (B, T), 0, cfg.vocab_size, dtype=jnp.int32)

    fwd = jax.jit(functools.partial(bert_moe_forward, params))
    out = fwd(input_ids, token_type_ids, labels)
    jax.block_until_ready(out['logits'])
    jax.block_until_ready(out['loss'])

    assert out['logits'].shape == (B, T, cfg.vocab_size)
    assert out['loss'].shape == ()
    print("KERNEL_OK")
</pallas_src>

<mosaic_0001>
module attributes {stable_mosaic.version = 11 : i64} {
  func.func @classifier_kernel(%arg0: i32, %arg1: i32, %arg2: memref<16x32xbf16, #tpu.memory_space<vmem>>, %arg3: memref<32x128xbf16, #tpu.memory_space<vmem>>, %arg4: memref<1x128xf32, #tpu.memory_space<vmem>>, %arg5: memref<16x128xf32, #tpu.memory_space<vmem>>) attributes {dimension_semantics = [#tpu.dimension_semantics<parallel>, #tpu.dimension_semantics<parallel>], iteration_bounds = array<i64: 1, 1>, scalar_prefetch = 0 : i64, scratch_operands = 0 : i64, tpu.core_type = #tpu.core_type<tc>, window_params = [{transform_indices = @transform_0, window_bounds = array<i64: 16, 32>}, {transform_indices = @transform_1, window_bounds = array<i64: 32, 128>}, {transform_indices = @transform_2, window_bounds = array<i64: 1, 128>}, {transform_indices = @transform_3, window_bounds = array<i64: 16, 128>}]} {
    %c0 = arith.constant 0 : index
    %c0_0 = arith.constant 0 : index
    %0 = vector.load %arg2[%c0, %c0_0] : memref<16x32xbf16, #tpu.memory_space<vmem>>, vector<16x32xbf16>
    %c0_1 = arith.constant 0 : index
    %c0_2 = arith.constant 0 : index
    %1 = vector.load %arg3[%c0_1, %c0_2] : memref<32x128xbf16, #tpu.memory_space<vmem>>, vector<32x128xbf16>
    %cst = arith.constant dense<0.000000e+00> : vector<16x128xf32>
    %2 = tpu.matmul %0, %1, %cst {dimension_numbers = #tpu.dot_dimension_numbers<[1], [0], [0], [1], [0, 0, 1, 1], [], []>} : vector<16x32xbf16>, vector<32x128xbf16>, vector<16x128xf32> -> vector<16x128xf32>
    %c0_3 = arith.constant 0 : index
    %c0_4 = arith.constant 0 : index
    %3 = vector.load %arg4[%c0_3, %c0_4] : memref<1x128xf32, #tpu.memory_space<vmem>>, vector<1x128xf32>
    %4 = vector.broadcast %3 : vector<1x128xf32> to vector<16x128xf32>
    %5 = arith.addf %2, %4 : vector<16x128xf32>
    %c0_5 = arith.constant 0 : index
    %c0_6 = arith.constant 0 : index
    %6 = vector.load %arg5[%c0_5, %c0_6] : memref<16x128xf32, #tpu.memory_space<vmem>>, vector<16x128xf32>
    tpu.vector_store %arg5[%c0_5, %c0_6], %5 {strides = array<i32>} : memref<16x128xf32, #tpu.memory_space<vmem>>, vector<16x128xf32>,
    return
  }
  func.func @transform_0(%arg0: i32, %arg1: i32) -> (i32, i32) {
    %c0_i32 = arith.constant 0 : i32
    %c0_i32_0 = arith.constant 0 : i32
    return %arg0, %c0_i32 : i32, i32
  }
  func.func @transform_1(%arg0: i32, %arg1: i32) -> (i32, i32) {
    %c0_i32 = arith.constant 0 : i32
    %c0_i32_0 = arith.constant 0 : i32
    return %c0_i32, %arg1 : i32, i32
  }
  func.func @transform_2(%arg0: i32, %arg1: i32) -> (i32, i32) {
    %c0_i32 = arith.constant 0 : i32
    %c0_i32_0 = arith.constant 0 : i32
    return %c0_i32, %arg1 : i32, i32
  }
  func.func @transform_3(%arg0: i32, %arg1: i32) -> (i32, i32) {
    %c0_i32 = arith.constant 0 : i32
    return %arg0, %arg1 : i32, i32
  }
}

module attributes {stable_mosaic.version = 11 : i64} {
  func.func @encoder_kernel(%arg0: i32, %arg1: i32, %arg2: memref<1x8x32xbf16, #tpu.memory_space<vmem>>, %arg3: memref<8x32xbf16, #tpu.memory_space<vmem>>, %arg4: memref<1x8x32xbf16, #tpu.memory_space<vmem>>, %arg5: memref<1x32xf32, #tpu.memory_space<vmem>>, %arg6: memref<1x32xf32, #tpu.memory_space<vmem>>, %arg7: memref<1x12x32x8xbf16, #tpu.memory_space<vmem>>, %arg8: memref<1x12x1x8xf32, #tpu.memory_space<vmem>>, %arg9: memref<1x4x8x32xbf16, #tpu.memory_space<vmem>>, %arg10: memref<1x1x32xf32, #tpu.memory_space<vmem>>, %arg11: memref<1x1x32xf32, #tpu.memory_space<vmem>>, %arg12: memref<1x1x32xf32, #tpu.memory_space<vmem>>, %arg13: memref<1x32x6xbf16, #tpu.memory_space<vmem>>, %arg14: memref<1x1x6xf32, #tpu.memory_space<vmem>>, %arg15: memref<1x6x32x128xbf16, #tpu.memory_space<vmem>>, %arg16: memref<1x6x1x128xf32, #tpu.memory_space<vmem>>, %arg17: memref<1x6x128x32xbf16, #tpu.memory_space<vmem>>, %arg18: memref<1x6x1x32xf32, #tpu.memory_space<vmem>>, %arg19: memref<1x32x32xbf16, #tpu.memory_space<vmem>>, %arg20: memref<1x1x32xf32, #tpu.memory_space<vmem>>, %arg21: memref<1x1x32xf32, #tpu.memory_space<vmem>>, %arg22: memref<1x1x32xf32, #tpu.memory_space<vmem>>, %arg23: memref<1x8x32xbf16, #tpu.memory_space<vmem>>, %arg24: memref<8x32xf32, #tpu.memory_space<vmem>>) attributes {dimension_semantics = [#tpu.dimension_semantics<parallel>, #tpu.dimension_semantics<arbitrary>], iteration_bounds = array<i64: 2, 2>, scalar_prefetch = 0 : i64, scratch_operands = 1 : i64, tpu.core_type = #tpu.core_type<tc>, window_params = [{transform_indices = @transform_0, window_bounds = array<i64: 1, 8, 32>}, {pipeline_mode = #tpu.pipeline_mode<synchronous>, transform_indices = @transform_1, window_bounds = array<i64: 8, 32>}, {transform_indices = @transform_2, window_bounds = array<i64: 1, 8, 32>}, {pipeline_mode = #tpu.pipeline_mode<synchronous>, transform_indices = @transform_3, window_bounds = array<i64: 1, 32>}, {pipeline_mode = #tpu.pipeline_mode<synchronous>, transform_indices = @transform_4, window_bounds = array<i64: 1, 32>}, {transform_indices = @transform_5, window_bounds = array<i64: 1, 12, 32, 8>}, {transform_indices = @transform_6, window_bounds = array<i64: 1, 12, 1, 8>}, {transform_indices = @transform_7, window_bounds = array<i64: 1, 4, 8, 32>}, {transform_indices = @transform_8, window_bounds = array<i64: 1, 1, 32>}, {transform_indices = @transform_9, window_bounds = array<i64: 1, 1, 32>}, {transform_indices = @transform_10, window_bounds = array<i64: 1, 1, 32>}, {transform_indices = @transform_11, window_bounds = array<i64: 1, 32, 6>}, {transform_indices = @transform_12, window_bounds = array<i64: 1, 1, 6>}, {transform_indices = @transform_13, window_bounds = array<i64: 1, 6, 32, 128>}, {transform_indices = @transform_14, window_bounds = array<i64: 1, 6, 1, 128>}, {transform_indices = @transform_15, window_bounds = array<i64: 1, 6, 128, 32>}, {transform_indices = @transform_16, window_bounds = array<i64: 1, 6, 1, 32>}, {transform_indices = @transform_17, window_bounds = array<i64: 1, 32, 32>}, {transform_indices = @transform_18, window_bounds = array<i64: 1, 1, 32>}, {transform_indices = @transform_19, window_bounds = array<i64: 1, 1, 32>}, {transform_indices = @transform_20, window_bounds = array<i64: 1, 1, 32>}, {transform_indices = @transform_21, window_bounds = array<i64: 1, 8, 32>}]} {
    %c0_i32 = arith.constant 0 : i32
    %0 = arith.cmpi eq, %arg1, %c0_i32 : i32
    %1 = arith.extui %0 : i1 to i32
    %c0_i32_0 = arith.constant 0 : i32
    %2 = arith.cmpi ne, %1, %c0_i32_0 : i32
    scf.if %2 {
      %c0_94 = arith.constant 0 : index
      %c0_95 = arith.constant 0 : index
      %c0_96 = arith.constant 0 : index
      %225 = vector.load %arg2[%c0_94, %c0_95, %c0_96] : memref<1x8x32xbf16, #tpu.memory_space<vmem>>, vector<1x8x32xbf16>
      %226 = vector.shape_cast %225 : vector<1x8x32xbf16> to vector<8x32xbf16>
      %227 = arith.extf %226 : vector<8x32xbf16> to vector<8x32xf32>
      %c0_97 = arith.constant 0 : index
      %c0_98 = arith.constant 0 : index
      %228 = vector.load %arg3[%c0_97, %c0_98] : memref<8x32xbf16, #tpu.memory_space<vmem>>, vector<8x32xbf16>
      %229 = arith.extf %228 : vector<8x32xbf16> to vector<8x32xf32>
      %230 = arith.addf %227, %229 : vector<8x32xf32>
      %c0_99 = arith.constant 0 : index
      %c0_100 = arith.constant 0 : index
      %c0_101 = arith.constant 0 : index
      %231 = vector.load %arg4[%c0_99, %c0_100, %c0_101] : memref<1x8x32xbf16, #tpu.memory_space<vmem>>, vector<1x8x32xbf16>
      %232 = vector.shape_cast %231 : vector<1x8x32xbf16> to vector<8x32xbf16>
      %233 = arith.extf %232 : vector<8x32xbf16> to vector<8x32xf32>
      %234 = arith.addf %230, %233 : vector<8x32xf32>
      %c0_102 = arith.constant 0 : index
      %c0_103 = arith.constant 0 : index
      %235 = vector.load %arg5[%c0_102, %c0_103] : memref<1x32xf32, #tpu.memory_space<vmem>>, vector<1x32xf32>
      %c0_104 = arith.constant 0 : index
      %c0_105 = arith.constant 0 : index
      %236 = vector.load %arg6[%c0_104, %c0_105] : memref<1x32xf32, #tpu.memory_space<vmem>>, vector<1x32xf32>
      %cst_106 = arith.constant dense<0.000000e+00> : vector<8xf32>
      %237 = vector.multi_reduction <add>, %234, %cst_106 [1] : vector<8x32xf32> to vector<8xf32>
      %238 = vector.shape_cast %237 : vector<8xf32> to vector<8x1xf32>
      %cst_107 = arith.constant 3.200000e+01 : f32
      %239 = vector.broadcast %cst_107 : f32 to vector<8x1xf32>
      %240 = arith.divf %238, %239 : vector<8x1xf32>
      %241 = vector.broadcast %240 : vector<8x1xf32> to vector<8x32xf32>
      %242 = arith.subf %234, %241 : vector<8x32xf32>
      %243 = arith.mulf %242, %242 : vector<8x32xf32>
      %cst_108 = arith.constant dense<0.000000e+00> : vector<8xf32>
      %244 = vector.multi_reduction <add>, %243, %cst_108 [1] : vector<8x32xf32> to vector<8xf32>
      %245 = vector.shape_cast %244 : vector<8xf32> to vector<8x1xf32>
      %cst_109 = arith.constant 3.200000e+01 : f32
      %246 = vector.broadcast %cst_109 : f32 to vector<8x1xf32>
      %247 = arith.divf %245, %246 : vector<8x1xf32>
      %248 = vector.broadcast %240 : vector<8x1xf32> to vector<8x32xf32>
      %249 = arith.subf %234, %248 : vector<8x32xf32>
      %cst_110 = arith.constant 9.99999996E-13 : f32
      %250 = vector.broadcast %cst_110 : f32 to vector<8x1xf32>
      %251 = arith.addf %247, %250 : vector<8x1xf32>
      %252 = math.rsqrt %251 : vector<8x1xf32>
      %253 = vector.broadcast %252 : vector<8x1xf32> to vector<8x32xf32>
      %254 = arith.mulf %249, %253 : vector<8x32xf32>
      %255 = vector.broadcast %235 : vector<1x32xf32> to vector<8x32xf32>
      %256 = arith.mulf %254, %255 : vector<8x32xf32>
      %257 = vector.broadcast %236 : vector<1x32xf32> to vector<8x32xf32>
      %258 = arith.addf %256, %257 : vector<8x32xf32>
      %c0_111 = arith.constant 0 : index
      %c0_112 = arith.constant 0 : index
      %259 = vector.load %arg24[%c0_111, %c0_112] : memref<8x32xf32, #tpu.memory_space<vmem>>, vector<8x32xf32>
      tpu.vector_store %arg24[%c0_111, %c0_112], %258 {strides = array<i32>} : memref<8x32xf32, #tpu.memory_space<vmem>>, vector<8x32xf32>,
    } else {
    }
    %c0 = arith.constant 0 : index
    %c0_1 = arith.constant 0 : index
    %3 = vector.load %arg24[%c0, %c0_1] : memref<8x32xf32, #tpu.memory_space<vmem>>, vector<8x32xf32>
    %4 = arith.truncf %3 : vector<8x32xf32> to vector<8x32xbf16>
    %5 = vector.shape_cast %4 : vector<8x32xbf16> to vector<1x8x32xbf16>
    %6 = vector.broadcast %5 : vector<1x8x32xbf16> to vector<12x8x32xbf16>
    %c0_2 = arith.constant 0 : index
    %c0_3 = arith.constant 0 : index
    %c0_4 = arith.constant 0 : index
    %c0_5 = arith.constant 0 : index
    %7 = vector.load %arg7[%c0_2, %c0_3, %c0_4, %c0_5] : memref<1x12x32x8xbf16, #tpu.memory_space<vmem>>, vector<1x12x32x8xbf16>
    %8 = vector.shape_cast %7 : vector<1x12x32x8xbf16> to vector<12x32x8xbf16>
    "tpu.trace_start"() <{level = 10 : i32, message = "gtc,gcd->gtd"}> : () -> ()
    %cst = arith.constant dense<0.000000e+00> : vector<12x8x8xf32>
    %9 = tpu.matmul %6, %8, %cst {dimension_numbers = #tpu.dot_dimension_numbers<[2], [1], [1], [2], [0, 0, 0, 1, 1, 2], [0], [0]>} : vector<12x8x32xbf16>, vector<12x32x8xbf16>, vector<12x8x8xf32> -> vector<12x8x8xf32>
    "tpu.trace_stop"() : () -> ()
    %c0_6 = arith.constant 0 : index
    %c0_7 = arith.constant 0 : index
    %c0_8 = arith.constant 0 : index
    %c0_9 = arith.constant 0 : index
    %10 = vector.load %arg8[%c0_6, %c0_7, %c0_8, %c0_9] : memref<1x12x1x8xf32, #tpu.memory_space<vmem>>, vector<1x12x1x8xf32>
    %11 = vector.shape_cast %10 : vector<1x12x1x8xf32> to vector<12x1x8xf32>
    %12 = vector.broadcast %11 : vector<12x1x8xf32> to vector<12x8x8xf32>
    %13 = arith.addf %9, %12 : vector<12x8x8xf32>
    %14 = vector.extract_strided_slice %13 {offsets = [0, 0, 0], sizes = [4, 8, 8], strides = [1, 1, 1]} : vector<12x8x8xf32> to vector<4x8x8xf32>
    %15 = vector.extract_strided_slice %13 {offsets = [4, 0, 0], sizes = [4, 8, 8], strides = [1, 1, 1]} : vector<12x8x8xf32> to vector<4x8x8xf32>
    %16 = vector.extract_strided_slice %13 {offsets = [8, 0, 0], sizes = [4, 8, 8], strides = [1, 1, 1]} : vector<12x8x8xf32> to vector<4x8x8xf32>
    %17 = arith.truncf %14 : vector<4x8x8xf32> to vector<4x8x8xbf16>
    %18 = arith.truncf %15 : vector<4x8x8xf32> to vector<4x8x8xbf16>
    "tpu.trace_start"() <{level = 10 : i32, message = "hqd,hkd->hqk"}> : () -> ()
    %cst_10 = arith.constant dense<0.000000e+00> : vector<4x8x8xf32>
    %19 = tpu.matmul %17, %18, %cst_10 {dimension_numbers = #tpu.dot_dimension_numbers<[2], [2], [1], [1], [0, 0, 0, 1, 1, 1], [0], [0]>} : vector<4x8x8xbf16>, vector<4x8x8xbf16>, vector<4x8x8xf32> -> vector<4x8x8xf32>
    "tpu.trace_stop"() : () -> ()
    %cst_11 = arith.constant 0.353553385 : f32
    %20 = vector.broadcast %cst_11 : f32 to vector<4x8x8xf32>
    %21 = arith.mulf %19, %20 : vector<4x8x8xf32>
    %cst_12 = arith.constant dense<0xFF800000> : vector<4x8xf32>
    %22 = vector.multi_reduction <maximumf>, %21, %cst_12 [2] : vector<4x8x8xf32> to vector<4x8xf32>
    %23 = vector.shape_cast %22 : vector<4x8xf32> to vector<4x8x1xf32>
    %24 = vector.broadcast %23 : vector<4x8x1xf32> to vector<4x8x8xf32>
    %25 = arith.subf %21, %24 : vector<4x8x8xf32>
    %26 = math.exp %25 : vector<4x8x8xf32>
    %cst_13 = arith.constant dense<0.000000e+00> : vector<4x8xf32>
    %27 = vector.multi_reduction <add>, %26, %cst_13 [2] : vector<4x8x8xf32> to vector<4x8xf32>
    %28 = vector.shape_cast %27 : vector<4x8xf32> to vector<4x8x1xf32>
    %29 = tpu.reciprocal %28 {approx = true} : vector<4x8x1xf32> -> vector<4x8x1xf32>
    %30 = vector.broadcast %29 : vector<4x8x1xf32> to vector<4x8x8xf32>
    %31 = arith.mulf %26, %30 : vector<4x8x8xf32>
    %32 = arith.truncf %31 : vector<4x8x8xf32> to vector<4x8x8xbf16>
    %33 = arith.truncf %16 : vector<4x8x8xf32> to vector<4x8x8xbf16>
    "tpu.trace_start"() <{level = 10 : i32, message = "hqk,hkd->hqd"}> : () -> ()
    %cst_14 = arith.constant dense<0.000000e+00> : vector<4x8x8xf32>
    %34 = tpu.matmul %32, %33, %cst_14 {dimension_numbers = #tpu.dot_dimension_numbers<[2], [1], [1], [2], [0, 0, 0, 1, 1, 2], [0], [0]>} : vector<4x8x8xbf16>, vector<4x8x8xbf16>, vector<4x8x8xf32> -> vector<4x8x8xf32>
    "tpu.trace_stop"() : () -> ()
    %35 = arith.truncf %34 : vector<4x8x8xf32> to vector<4x8x8xbf16>
    %c0_15 = arith.constant 0 : index
    %c0_16 = arith.constant 0 : index
    %c0_17 = arith.constant 0 : index
    %c0_18 = arith.constant 0 : index
    %36 = vector.load %arg9[%c0_15, %c0_16, %c0_17, %c0_18] : memref<1x4x8x32xbf16, #tpu.memory_space<vmem>>, vector<1x4x8x32xbf16>
    %37 = vector.shape_cast %36 : vector<1x4x8x32xbf16> to vector<4x8x32xbf16>
    "tpu.trace_start"() <{level = 10 : i32, message = "hqd,hdc->hqc"}> : () -> ()
    %cst_19 = arith.constant dense<0.000000e+00> : vector<4x8x32xf32>
    %38 = tpu.matmul %35, %37, %cst_19 {dimension_numbers = #tpu.dot_dimension_numbers<[2], [1], [1], [2], [0, 0, 0, 1, 1, 2], [0], [0]>} : vector<4x8x8xbf16>, vector<4x8x32xbf16>, vector<4x8x32xf32> -> vector<4x8x32xf32>
    "tpu.trace_stop"() : () -> ()
    %cst_20 = arith.constant dense<0.000000e+00> : vector<8x32xf32>
    %39 = vector.multi_reduction <add>, %38, %cst_20 [0] : vector<4x8x32xf32> to vector<8x32xf32>
    %c0_21 = arith.constant 0 : index
    %c0_22 = arith.constant 0 : index
    %c0_23 = arith.constant 0 : index
    %40 = vector.load %arg10[%c0_21, %c0_22, %c0_23] : memref<1x1x32xf32, #tpu.memory_space<vmem>>, vector<1x1x32xf32>
    %41 = vector.shape_cast %40 : vector<1x1x32xf32> to vector<1x32xf32>
    %42 = vector.broadcast %41 : vector<1x32xf32> to vector<8x32xf32>
    %43 = arith.addf %39, %42 : vector<8x32xf32>
    %c0_24 = arith.constant 0 : index
    %c0_25 = arith.constant 0 : index
    %c0_26 = arith.constant 0 : index
    %44 = vector.load %arg11[%c0_24, %c0_25, %c0_26] : memref<1x1x32xf32, #tpu.memory_space<vmem>>, vector<1x1x32xf32>
    %45 = vector.shape_cast %44 : vector<1x1x32xf32> to vector<1x32xf32>
    %c0_27 = arith.constant 0 : index
    %c0_28 = arith.constant 0 : index
    %c0_29 = arith.constant 0 : index
    %46 = vector.load %arg12[%c0_27, %c0_28, %c0_29] : memref<1x1x32xf32, #tpu.memory_space<vmem>>, vector<1x1x32xf32>
    %47 = vector.shape_cast %46 : vector<1x1x32xf32> to vector<1x32xf32>
    %cst_30 = arith.constant dense<0.000000e+00> : vector<8xf32>
    %48 = vector.multi_reduction <add>, %43, %cst_30 [1] : vector<8x32xf32> to vector<8xf32>
    %49 = vector.shape_cast %48 : vector<8xf32> to vector<8x1xf32>
    %cst_31 = arith.constant 3.200000e+01 : f32
    %50 = vector.broadcast %cst_31 : f32 to vector<8x1xf32>
    %51 = arith.divf %49, %50 : vector<8x1xf32>
    %52 = vector.broadcast %51 : vector<8x1xf32> to vector<8x32xf32>
    %53 = arith.subf %43, %52 : vector<8x32xf32>
    %54 = arith.mulf %53, %53 : vector<8x32xf32>
    %cst_32 = arith.constant dense<0.000000e+00> : vector<8xf32>
    %55 = vector.multi_reduction <add>, %54, %cst_32 [1] : vector<8x32xf32> to vector<8xf32>
    %56 = vector.shape_cast %55 : vector<8xf32> to vector<8x1xf32>
    %cst_33 = arith.constant 3.200000e+01 : f32
    %57 = vector.broadcast %cst_33 : f32 to vector<8x1xf32>
    %58 = arith.divf %56, %57 : vector<8x1xf32>
    %59 = vector.broadcast %51 : vector<8x1xf32> to vector<8x32xf32>
    %60 = arith.subf %43, %59 : vector<8x32xf32>
    %cst_34 = arith.constant 9.99999996E-13 : f32
    %61 = vector.broadcast %cst_34 : f32 to vector<8x1xf32>
    %62 = arith.addf %58, %61 : vector<8x1xf32>
    %63 = math.rsqrt %62 : vector<8x1xf32>
    %64 = vector.broadcast %63 : vector<8x1xf32> to vector<8x32xf32>
    %65 = arith.mulf %60, %64 : vector<8x32xf32>
    %66 = vector.broadcast %45 : vector<1x32xf32> to vector<8x32xf32>
    %67 = arith.mulf %65, %66 : vector<8x32xf32>
    %68 = vector.broadcast %47 : vector<1x32xf32> to vector<8x32xf32>
    %69 = arith.addf %67, %68 : vector<8x32xf32>
    %70 = arith.addf %3, %69 : vector<8x32xf32>
    %71 = arith.truncf %70 : vector<8x32xf32> to vector<8x32xbf16>
    %c0_35 = arith.constant 0 : index
    %c0_36 = arith.constant 0 : index
    %c0_37 = arith.constant 0 : index
    %72 = vector.load %arg13[%c0_35, %c0_36, %c0_37] : memref<1x32x6xbf16, #tpu.memory_space<vmem>>, vector<1x32x6xbf16>
    %73 = vector.shape_cast %72 : vector<1x32x6xbf16> to vector<32x6xbf16>
    %cst_38 = arith.constant dense<0.000000e+00> : vector<8x6xf32>
    %74 = tpu.matmul %71, %73, %cst_38 {dimension_numbers = #tpu.dot_dimension_numbers<[1], [0], [0], [1], [0, 0, 1, 1], [], []>} : vector<8x32xbf16>, vector<32x6xbf16>, vector<8x6xf32> -> vector<8x6xf32>
    %c0_39 = arith.constant 0 : index
    %c0_40 = arith.constant 0 : index
    %c0_41 = arith.constant 0 : index
    %75 = vector.load %arg14[%c0_39, %c0_40, %c0_41] : memref<1x1x6xf32, #tpu.memory_space<vmem>>, vector<1x1x6xf32>
    %76 = vector.shape_cast %75 : vector<1x1x6xf32> to vector<1x6xf32>
    %77 = vector.broadcast %76 : vector<1x6xf32> to vector<8x6xf32>
    %78 = arith.addf %74, %77 : vector<8x6xf32>
    %79 = tpu.iota {dimensions = array<i32: 1>} : vector<8x6xi32>
    %cst_42 = arith.constant dense<0xFF800000> : vector<8xf32>
    %80 = vector.multi_reduction <maximumf>, %78, %cst_42 [1] : vector<8x6xf32> to vector<8xf32>
    %81 = vector.shape_cast %80 : vector<8xf32> to vector<8x1xf32>
    %82 = vector.broadcast %81 : vector<8x1xf32> to vector<8x6xf32>
    %83 = arith.cmpf oeq, %78, %82 : vector<8x6xf32>
    %c6_i32 = arith.constant 6 : i32
    %84 = vector.broadcast %c6_i32 : i32 to vector<8x6xi32>
    %85 = arith.select %83, %79, %84 : vector<8x6xi1>, vector<8x6xi32>
    %cst_43 = arith.constant dense<2147483647> : vector<8xi32>
    %86 = vector.multi_reduction <minsi>, %85, %cst_43 [1] : vector<8x6xi32> to vector<8xi32>
    %87 = vector.shape_cast %86 : vector<8xi32> to vector<8x1xi32>
    %88 = vector.broadcast %87 : vector<8x1xi32> to vector<8x6xi32>
    %89 = arith.cmpi eq, %79, %88 : vector<8x6xi32>
    %cst_44 = arith.constant -1.000000e+30 : f32
    %90 = vector.broadcast %cst_44 : f32 to vector<8x6xf32>
    %91 = arith.select %89, %90, %78 : vector<8x6xi1>, vector<8x6xf32>
    %cst_45 = arith.constant dense<0xFF800000> : vector<8xf32>
    %92 = vector.multi_reduction <maximumf>, %91, %cst_45 [1] : vector<8x6xf32> to vector<8xf32>
    %93 = vector.shape_cast %92 : vector<8xf32> to vector<8x1xf32>
    %94 = vector.broadcast %93 : vector<8x1xf32> to vector<8x6xf32>
    %95 = arith.cmpf oeq, %91, %94 : vector<8x6xf32>
    %c6_i32_46 = arith.constant 6 : i32
    %96 = vector.broadcast %c6_i32_46 : i32 to vector<8x6xi32>
    %97 = arith.select %95, %79, %96 : vector<8x6xi1>, vector<8x6xi32>
    %cst_47 = arith.constant dense<2147483647> : vector<8xi32>
    %98 = vector.multi_reduction <minsi>, %97, %cst_47 [1] : vector<8x6xi32> to vector<8xi32>
    %99 = vector.shape_cast %98 : vector<8xi32> to vector<8x1xi32>
    %100 = vector.broadcast %99 : vector<8x1xi32> to vector<8x6xi32>
    %101 = arith.cmpi eq, %79, %100 : vector<8x6xi32>
    %102 = arith.subf %93, %81 : vector<8x1xf32>
    %103 = arith.negf %102 : vector<8x1xf32>
    %104 = math.exp %103 : vector<8x1xf32>
    %cst_48 = arith.constant 1.000000e+00 : f32
    %105 = vector.broadcast %cst_48 : f32 to vector<8x1xf32>
    %106 = arith.addf %105, %104 : vector<8x1xf32>
    %107 = arith.divf %105, %106 : vector<8x1xf32>
    %cst_49 = arith.constant 1.000000e+00 : f32
    %108 = vector.broadcast %cst_49 : f32 to vector<8x1xf32>
    %109 = arith.subf %108, %107 : vector<8x1xf32>
    %110 = arith.extui %89 : vector<8x6xi1> to vector<8x6xi32>
    %111 = arith.sitofp %110 : vector<8x6xi32> to vector<8x6xf32>
    %112 = vector.broadcast %109 : vector<8x1xf32> to vector<8x6xf32>
    %113 = arith.mulf %112, %111 : vector<8x6xf32>
    %114 = arith.extui %101 : vector<8x6xi1> to vector<8x6xi32>
    %115 = arith.sitofp %114 : vector<8x6xi32> to vector<8x6xf32>
    %116 = vector.broadcast %107 : vector<8x1xf32> to vector<8x6xf32>
    %117 = arith.mulf %116, %115 : vector<8x6xf32>
    %118 = arith.addf %113, %117 : vector<8x6xf32>
    %119 = vector.shape_cast %71 : vector<8x32xbf16> to vector<1x8x32xbf16>
    %120 = vector.broadcast %119 : vector<1x8x32xbf16> to vector<6x8x32xbf16>
    %c0_50 = arith.constant 0 : index
    %c0_51 = arith.constant 0 : index
    %c0_52 = arith.constant 0 : index
    %c0_53 = arith.constant 0 : index
    %121 = vector.load %arg15[%c0_50, %c0_51, %c0_52, %c0_53] : memref<1x6x32x128xbf16, #tpu.memory_space<vmem>>, vector<1x6x32x128xbf16>
    %122 = vector.shape_cast %121 : vector<1x6x32x128xbf16> to vector<6x32x128xbf16>
    "tpu.trace_start"() <{level = 10 : i32, message = "etc,ech->eth"}> : () -> ()
    %cst_54 = arith.constant dense<0.000000e+00> : vector<6x8x128xf32>
    %123 = tpu.matmul %120, %122, %cst_54 {dimension_numbers = #tpu.dot_dimension_numbers<[2], [1], [1], [2], [0, 0, 0, 1, 1, 2], [0], [0]>} : vector<6x8x32xbf16>, vector<6x32x128xbf16>, vector<6x8x128xf32> -> vector<6x8x128xf32>
    "tpu.trace_stop"() : () -> ()
    %c0_55 = arith.constant 0 : index
    %c0_56 = arith.constant 0 : index
    %c0_57 = arith.constant 0 : index
    %c0_58 = arith.constant 0 : index
    %124 = vector.load %arg16[%c0_55, %c0_56, %c0_57, %c0_58] : memref<1x6x1x128xf32, #tpu.memory_space<vmem>>, vector<1x6x1x128xf32>
    %125 = vector.shape_cast %124 : vector<1x6x1x128xf32> to vector<6x1x128xf32>
    %126 = vector.broadcast %125 : vector<6x1x128xf32> to vector<6x8x128xf32>
    %127 = arith.addf %123, %126 : vector<6x8x128xf32>
    %128 = arith.mulf %127, %127 : vector<6x8x128xf32>
    %129 = arith.mulf %127, %128 : vector<6x8x128xf32>
    %cst_59 = arith.constant 4.471500e-02 : f32
    %130 = vector.broadcast %cst_59 : f32 to vector<6x8x128xf32>
    %131 = arith.mulf %130, %129 : vector<6x8x128xf32>
    %132 = arith.addf %127, %131 : vector<6x8x128xf32>
    %cst_60 = arith.constant 0.797884583 : f32
    %133 = vector.broadcast %cst_60 : f32 to vector<6x8x128xf32>
    %134 = arith.mulf %133, %132 : vector<6x8x128xf32>
    %135 = math.tanh %134 : vector<6x8x128xf32>
    %cst_61 = arith.constant 1.000000e+00 : f32
    %136 = vector.broadcast %cst_61 : f32 to vector<6x8x128xf32>
    %137 = arith.addf %136, %135 : vector<6x8x128xf32>
    %cst_62 = arith.constant 5.000000e-01 : f32
    %138 = vector.broadcast %cst_62 : f32 to vector<6x8x128xf32>
    %139 = arith.mulf %138, %137 : vector<6x8x128xf32>
    %140 = arith.mulf %127, %139 : vector<6x8x128xf32>
    %141 = arith.truncf %140 : vector<6x8x128xf32> to vector<6x8x128xbf16>
    %c0_63 = arith.constant 0 : index
    %c0_64 = arith.constant 0 : index
    %c0_65 = arith.constant 0 : index
    %c0_66 = arith.constant 0 : index
    %142 = vector.load %arg17[%c0_63, %c0_64, %c0_65, %c0_66] : memref<1x6x128x32xbf16, #tpu.memory_space<vmem>>, vector<1x6x128x32xbf16>
    %143 = vector.shape_cast %142 : vector<1x6x128x32xbf16> to vector<6x128x32xbf16>
    "tpu.trace_start"() <{level = 10 : i32, message = "eth,ehc->etc"}> : () -> ()
    %cst_67 = arith.constant dense<0.000000e+00> : vector<6x8x32xf32>
    %144 = tpu.matmul %141, %143, %cst_67 {dimension_numbers = #tpu.dot_dimension_numbers<[2], [1], [1], [2], [0, 0, 0, 1, 1, 2], [0], [0]>} : vector<6x8x128xbf16>, vector<6x128x32xbf16>, vector<6x8x32xf32> -> vector<6x8x32xf32>
    "tpu.trace_stop"() : () -> ()
    %c0_68 = arith.constant 0 : index
    %c0_69 = arith.constant 0 : index
    %c0_70 = arith.constant 0 : index
    %c0_71 = arith.constant 0 : index
    %145 = vector.load %arg18[%c0_68, %c0_69, %c0_70, %c0_71] : memref<1x6x1x32xf32, #tpu.memory_space<vmem>>, vector<1x6x1x32xf32>
    %146 = vector.shape_cast %145 : vector<1x6x1x32xf32> to vector<6x1x32xf32>
    %147 = vector.broadcast %146 : vector<6x1x32xf32> to vector<6x8x32xf32>
    %148 = arith.addf %144, %147 : vector<6x8x32xf32>
    %cst_72 = arith.constant 0.000000e+00 : f32
    %149 = vector.broadcast %cst_72 : f32 to vector<8x32xf32>
    %150 = vector.extract_strided_slice %118 {offsets = [0, 0], sizes = [8, 1], strides = [1, 1]} : vector<8x6xf32> to vector<8x1xf32>
    %151 = vector.extract_strided_slice %148 {offsets = [0, 0, 0], sizes = [1, 8, 32], strides = [1, 1, 1]} : vector<6x8x32xf32> to vector<1x8x32xf32>
    %152 = vector.shape_cast %151 : vector<1x8x32xf32> to vector<8x32xf32>
    %153 = vector.broadcast %150 : vector<8x1xf32> to vector<8x32xf32>
    %154 = arith.mulf %153, %152 : vector<8x32xf32>
    %155 = arith.addf %149, %154 : vector<8x32xf32>
    %156 = vector.extract_strided_slice %118 {offsets = [0, 1], sizes = [8, 1], strides = [1, 1]} : vector<8x6xf32> to vector<8x1xf32>
    %157 = vector.extract_strided_slice %148 {offsets = [1, 0, 0], sizes = [1, 8, 32], strides = [1, 1, 1]} : vector<6x8x32xf32> to vector<1x8x32xf32>
    %158 = vector.shape_cast %157 : vector<1x8x32xf32> to vector<8x32xf32>
    %159 = vector.broadcast %156 : vector<8x1xf32> to vector<8x32xf32>
    %160 = arith.mulf %159, %158 : vector<8x32xf32>
    %161 = arith.addf %155, %160 : vector<8x32xf32>
    %162 = vector.extract_strided_slice %118 {offsets = [0, 2], sizes = [8, 1], strides = [1, 1]} : vector<8x6xf32> to vector<8x1xf32>
    %163 = vector.extract_strided_slice %148 {offsets = [2, 0, 0], sizes = [1, 8, 32], strides = [1, 1, 1]} : vector<6x8x32xf32> to vector<1x8x32xf32>
    %164 = vector.shape_cast %163 : vector<1x8x32xf32> to vector<8x32xf32>
    %165 = vector.broadcast %162 : vector<8x1xf32> to vector<8x32xf32>
    %166 = arith.mulf %165, %164 : vector<8x32xf32>
    %167 = arith.addf %161, %166 : vector<8x32xf32>
    %168 = vector.extract_strided_slice %118 {offsets = [0, 3], sizes = [8, 1], strides = [1, 1]} : vector<8x6xf32> to vector<8x1xf32>
    %169 = vector.extract_strided_slice %148 {offsets = [3, 0, 0], sizes = [1, 8, 32], strides = [1, 1, 1]} : vector<6x8x32xf32> to vector<1x8x32xf32>
    %170 = vector.shape_cast %169 : vector<1x8x32xf32> to vector<8x32xf32>
    %171 = vector.broadcast %168 : vector<8x1xf32> to vector<8x32xf32>
    %172 = arith.mulf %171, %170 : vector<8x32xf32>
    %173 = arith.addf %167, %172 : vector<8x32xf32>
    %174 = vector.extract_strided_slice %118 {offsets = [0, 4], sizes = [8, 1], strides = [1, 1]} : vector<8x6xf32> to vector<8x1xf32>
    %175 = vector.extract_strided_slice %148 {offsets = [4, 0, 0], sizes = [1, 8, 32], strides = [1, 1, 1]} : vector<6x8x32xf32> to vector<1x8x32xf32>
    %176 = vector.shape_cast %175 : vector<1x8x32xf32> to vector<8x32xf32>
    %177 = vector.broadcast %174 : vector<8x1xf32> to vector<8x32xf32>
    %178 = arith.mulf %177, %176 : vector<8x32xf32>
    %179 = arith.addf %173, %178 : vector<8x32xf32>
    %180 = vector.extract_strided_slice %118 {offsets = [0, 5], sizes = [8, 1], strides = [1, 1]} : vector<8x6xf32> to vector<8x1xf32>
    %181 = vector.extract_strided_slice %148 {offsets = [5, 0, 0], sizes = [1, 8, 32], strides = [1, 1, 1]} : vector<6x8x32xf32> to vector<1x8x32xf32>
    %182 = vector.shape_cast %181 : vector<1x8x32xf32> to vector<8x32xf32>
    %183 = vector.broadcast %180 : vector<8x1xf32> to vector<8x32xf32>
    %184 = arith.mulf %183, %182 : vector<8x32xf32>
    %185 = arith.addf %179, %184 : vector<8x32xf32>
    %186 = arith.truncf %185 : vector<8x32xf32> to vector<8x32xbf16>
    %c0_73 = arith.constant 0 : index
    %c0_74 = arith.constant 0 : index
    %c0_75 = arith.constant 0 : index
    %187 = vector.load %arg19[%c0_73, %c0_74, %c0_75] : memref<1x32x32xbf16, #tpu.memory_space<vmem>>, vector<1x32x32xbf16>
    %188 = vector.shape_cast %187 : vector<1x32x32xbf16> to vector<32x32xbf16>
    %cst_76 = arith.constant dense<0.000000e+00> : vector<8x32xf32>
    %189 = tpu.matmul %186, %188, %cst_76 {dimension_numbers = #tpu.dot_dimension_numbers<[1], [0], [0], [1], [0, 0, 1, 1], [], []>} : vector<8x32xbf16>, vector<32x32xbf16>, vector<8x32xf32> -> vector<8x32xf32>
    %c0_77 = arith.constant 0 : index
    %c0_78 = arith.constant 0 : index
    %c0_79 = arith.constant 0 : index
    %190 = vector.load %arg20[%c0_77, %c0_78, %c0_79] : memref<1x1x32xf32, #tpu.memory_space<vmem>>, vector<1x1x32xf32>
    %191 = vector.shape_cast %190 : vector<1x1x32xf32> to vector<1x32xf32>
    %192 = vector.broadcast %191 : vector<1x32xf32> to vector<8x32xf32>
    %193 = arith.addf %189, %192 : vector<8x32xf32>
    %c0_80 = arith.constant 0 : index
    %c0_81 = arith.constant 0 : index
    %c0_82 = arith.constant 0 : index
    %194 = vector.load %arg21[%c0_80, %c0_81, %c0_82] : memref<1x1x32xf32, #tpu.memory_space<vmem>>, vector<1x1x32xf32>
    %195 = vector.shape_cast %194 : vector<1x1x32xf32> to vector<1x32xf32>
    %c0_83 = arith.constant 0 : index
    %c0_84 = arith.constant 0 : index
    %c0_85 = arith.constant 0 : index
    %196 = vector.load %arg22[%c0_83, %c0_84, %c0_85] : memref<1x1x32xf32, #tpu.memory_space<vmem>>, vector<1x1x32xf32>
    %197 = vector.shape_cast %196 : vector<1x1x32xf32> to vector<1x32xf32>
    %cst_86 = arith.constant dense<0.000000e+00> : vector<8xf32>
    %198 = vector.multi_reduction <add>, %193, %cst_86 [1] : vector<8x32xf32> to vector<8xf32>
    %199 = vector.shape_cast %198 : vector<8xf32> to vector<8x1xf32>
    %cst_87 = arith.constant 3.200000e+01 : f32
    %200 = vector.broadcast %cst_87 : f32 to vector<8x1xf32>
    %201 = arith.divf %199, %200 : vector<8x1xf32>
    %202 = vector.broadcast %201 : vector<8x1xf32> to vector<8x32xf32>
    %203 = arith.subf %193, %202 : vector<8x32xf32>
    %204 = arith.mulf %203, %203 : vector<8x32xf32>
    %cst_88 = arith.constant dense<0.000000e+00> : vector<8xf32>
    %205 = vector.multi_reduction <add>, %204, %cst_88 [1] : vector<8x32xf32> to vector<8xf32>
    %206 = vector.shape_cast %205 : vector<8xf32> to vector<8x1xf32>
    %cst_89 = arith.constant 3.200000e+01 : f32
    %207 = vector.broadcast %cst_89 : f32 to vector<8x1xf32>
    %208 = arith.divf %206, %207 : vector<8x1xf32>
    %209 = vector.broadcast %201 : vector<8x1xf32> to vector<8x32xf32>
    %210 = arith.subf %193, %209 : vector<8x32xf32>
    %cst_90 = arith.constant 9.99999996E-13 : f32
    %211 = vector.broadcast %cst_90 : f32 to vector<8x1xf32>
    %212 = arith.addf %208, %211 : vector<8x1xf32>
    %213 = math.rsqrt %212 : vector<8x1xf32>
    %214 = vector.broadcast %213 : vector<8x1xf32> to vector<8x32xf32>
    %215 = arith.mulf %210, %214 : vector<8x32xf32>
    %216 = vector.broadcast %195 : vector<1x32xf32> to vector<8x32xf32>
    %217 = arith.mulf %215, %216 : vector<8x32xf32>
    %218 = vector.broadcast %197 : vector<1x32xf32> to vector<8x32xf32>
    %219 = arith.addf %217, %218 : vector<8x32xf32>
    %220 = arith.addf %70, %219 : vector<8x32xf32>
    %c0_91 = arith.constant 0 : index
    %c0_92 = arith.constant 0 : index
    %221 = vector.load %arg24[%c0_91, %c0_92] : memref<8x32xf32, #tpu.memory_space<vmem>>, vector<8x32xf32>
    tpu.vector_store %arg24[%c0_91, %c0_92], %220 {strides = array<i32>} : memref<8x32xf32, #tpu.memory_space<vmem>>, vector<8x32xf32>,
    %c1_i32 = arith.constant 1 : i32
    %222 = arith.cmpi eq, %arg1, %c1_i32 : i32
    %223 = arith.extui %222 : i1 to i32
    %c0_i32_93 = arith.constant 0 : i32
    %224 = arith.cmpi ne, %223, %c0_i32_93 : i32
    scf.if %224 {
      %225 = arith.truncf %220 : vector<8x32xf32> to vector<8x32xbf16>
      %c0_94 = arith.constant 0 : index
      %c0_95 = arith.constant 0 : index
      %c0_96 = arith.constant 0 : index
      %226 = vector.load %arg23[%c0_94, %c0_95, %c0_96] : memref<1x8x32xbf16, #tpu.memory_space<vmem>>, vector<1x8x32xbf16>
      %227 = vector.shape_cast %226 : vector<1x8x32xbf16> to vector<8x32xbf16>
      %228 = vector.shape_cast %225 : vector<8x32xbf16> to vector<1x8x32xbf16>
      tpu.vector_store %arg23[%c0_94, %c0_95, %c0_96], %228 {strides = array<i32>} : memref<1x8x32xbf16, #tpu.memory_space<vmem>>, vector<1x8x32xbf16>,
    } else {
    }
    return
  }
  func.func @transform_0(%arg0: i32, %arg1: i32) -> (i32, i32, i32) {
    %c0_i32 = arith.constant 0 : i32
    %c0_i32_0 = arith.constant 0 : i32
    %c0_i32_1 = arith.constant 0 : i32
    return %arg0, %c0_i32, %c0_i32_0 : i32, i32, i32
  }
  func.func @transform_1(%arg0: i32, %arg1: i32) -> (i32, i32) {
    %c0_i32 = arith.constant 0 : i32
    %c0_i32_0 = arith.constant 0 : i32
    %c0_i32_1 = arith.constant 0 : i32
    return %c0_i32, %c0_i32_0 : i32, i32
  }
  func.func @transform_2(%arg0: i32, %arg1: i32) -> (i32, i32, i32) {
    %c0_i32 = arith.constant 0 : i32
    %c0_i32_0 = arith.constant 0 : i32
    %c0_i32_1 = arith.constant 0 : i32
    return %arg0, %c0_i32, %c0_i32_0 : i32, i32, i32
  }
  func.func @transform_3(%arg0: i32, %arg1: i32) -> (i32, i32) {
    %c0_i32 = arith.constant 0 : i32
    %c0_i32_0 = arith.constant 0 : i32
    %c0_i32_1 = arith.constant 0 : i32
    return %c0_i32, %c0_i32_0 : i32, i32
  }
  func.func @transform_4(%arg0: i32, %arg1: i32) -> (i32, i32) {
    %c0_i32 = arith.constant 0 : i32
    %c0_i32_0 = arith.constant 0 : i32
    %c0_i32_1 = arith.constant 0 : i32
    return %c0_i32, %c0_i32_0 : i32, i32
  }
  func.func @transform_5(%arg0: i32, %arg1: i32) -> (i32, i32, i32, i32) {
    %c0_i32 = arith.constant 0 : i32
    %c0_i32_0 = arith.constant 0 : i32
    %c0_i32_1 = arith.constant 0 : i32
    %c0_i32_2 = arith.constant 0 : i32
    return %arg1, %c0_i32, %c0_i32_0, %c0_i32_1 : i32, i32, i32, i32
  }
  func.func @transform_6(%arg0: i32, %arg1: i32) -> (i32, i32, i32, i32) {
    %c0_i32 = arith.constant 0 : i32
    %c0_i32_0 = arith.constant 0 : i32
    %c0_i32_1 = arith.constant 0 : i32
    %c0_i32_2 = arith.constant 0 : i32
    return %arg1, %c0_i32, %c0_i32_0, %c0_i32_1 : i32, i32, i32, i32
  }
  func.func @transform_7(%arg0: i32, %arg1: i32) -> (i32, i32, i32, i32) {
    %c0_i32 = arith.constant 0 : i32
    %c0_i32_0 = arith.constant 0 : i32
    %c0_i32_1 = arith.constant 0 : i32
    %c0_i32_2 = arith.constant 0 : i32
    return %arg1, %c0_i32, %c0_i32_0, %c0_i32_1 : i32, i32, i32, i32
  }
  func.func @transform_8(%arg0: i32, %arg1: i32) -> (i32, i32, i32) {
    %c0_i32 = arith.constant 0 : i32
    %c0_i32_0 = arith.constant 0 : i32
    %c0_i32_1 = arith.constant 0 : i32
    return %arg1, %c0_i32, %c0_i32_0 : i32, i32, i32
  }
  func.func @transform_9(%arg0: i32, %arg1: i32) -> (i32, i32, i32) {
    %c0_i32 = arith.constant 0 : i32
    %c0_i32_0 = arith.constant 0 : i32
    %c0_i32_1 = arith.constant 0 : i32
    return %arg1, %c0_i32, %c0_i32_0 : i32, i32, i32
  }
  func.func @transform_10(%arg0: i32, %arg1: i32) -> (i32, i32, i32) {
    %c0_i32 = arith.constant 0 : i32
    %c0_i32_0 = arith.constant 0 : i32
    %c0_i32_1 = arith.constant 0 : i32
    return %arg1, %c0_i32, %c0_i32_0 : i32, i32, i32
  }
  func.func @transform_11(%arg0: i32, %arg1: i32) -> (i32, i32, i32) {
    %c0_i32 = arith.constant 0 : i32
    %c0_i32_0 = arith.constant 0 : i32
    %c0_i32_1 = arith.constant 0 : i32
    return %arg1, %c0_i32, %c0_i32_0 : i32, i32, i32
  }
  func.func @transform_12(%arg0: i32, %arg1: i32) -> (i32, i32, i32) {
    %c0_i32 = arith.constant 0 : i32
    %c0_i32_0 = arith.constant 0 : i32
    %c0_i32_1 = arith.constant 0 : i32
    return %arg1, %c0_i32, %c0_i32_0 : i32, i32, i32
  }
  func.func @transform_13(%arg0: i32, %arg1: i32) -> (i32, i32, i32, i32) {
    %c0_i32 = arith.constant 0 : i32
    %c0_i32_0 = arith.constant 0 : i32
    %c0_i32_1 = arith.constant 0 : i32
    %c0_i32_2 = arith.constant 0 : i32
    return %arg1, %c0_i32, %c0_i32_0, %c0_i32_1 : i32, i32, i32, i32
  }
  func.func @transform_14(%arg0: i32, %arg1: i32) -> (i32, i32, i32, i32) {
    %c0_i32 = arith.constant 0 : i32
    %c0_i32_0 = arith.constant 0 : i32
    %c0_i32_1 = arith.constant 0 : i32
    %c0_i32_2 = arith.constant 0 : i32
    return %arg1, %c0_i32, %c0_i32_0, %c0_i32_1 : i32, i32, i32, i32
  }
  func.func @transform_15(%arg0: i32, %arg1: i32) -> (i32, i32, i32, i32) {
    %c0_i32 = arith.constant 0 : i32
    %c0_i32_0 = arith.constant 0 : i32
    %c0_i32_1 = arith.constant 0 : i32
    %c0_i32_2 = arith.constant 0 : i32
    return %arg1, %c0_i32, %c0_i32_0, %c0_i32_1 : i32, i32, i32, i32
  }
  func.func @transform_16(%arg0: i32, %arg1: i32) -> (i32, i32, i32, i32) {
    %c0_i32 = arith.constant 0 : i32
    %c0_i32_0 = arith.constant 0 : i32
    %c0_i32_1 = arith.constant 0 : i32
    %c0_i32_2 = arith.constant 0 : i32
    return %arg1, %c0_i32, %c0_i32_0, %c0_i32_1 : i32, i32, i32, i32
  }
  func.func @transform_17(%arg0: i32, %arg1: i32) -> (i32, i32, i32) {
    %c0_i32 = arith.constant 0 : i32
    %c0_i32_0 = arith.constant 0 : i32
    %c0_i32_1 = arith.constant 0 : i32
    return %arg1, %c0_i32, %c0_i32_0 : i32, i32, i32
  }
  func.func @transform_18(%arg0: i32, %arg1: i32) -> (i32, i32, i32) {
    %c0_i32 = arith.constant 0 : i32
    %c0_i32_0 = arith.constant 0 : i32
    %c0_i32_1 = arith.constant 0 : i32
    return %arg1, %c0_i32, %c0_i32_0 : i32, i32, i32
  }
  func.func @transform_19(%arg0: i32, %arg1: i32) -> (i32, i32, i32) {
    %c0_i32 = arith.constant 0 : i32
    %c0_i32_0 = arith.constant 0 : i32
    %c0_i32_1 = arith.constant 0 : i32
    return %arg1, %c0_i32, %c0_i32_0 : i32, i32, i32
  }
  func.func @transform_20(%arg0: i32, %arg1: i32) -> (i32, i32, i32) {
    %c0_i32 = arith.constant 0 : i32
    %c0_i32_0 = arith.constant 0 : i32
    %c0_i32_1 = arith.constant 0 : i32
    return %arg1, %c0_i32, %c0_i32_0 : i32, i32, i32
  }
  func.func @transform_21(%arg0: i32, %arg1: i32) -> (i32, i32, i32) {
    %c0_i32 = arith.constant 0 : i32
    %c0_i32_0 = arith.constant 0 : i32
    %c0_i32_1 = arith.constant 0 : i32
    return %arg0, %c0_i32, %c0_i32_0 : i32, i32, i32
  }
}

</mosaic_0001>

<bundles_post_ra>
// kernel: bert_moe_forward.3
= control target key start
LH: loop header
LB: loop body
LE: loop exit
PB: predicated region body
PF: predicated region fallthrough
CT: control target
= control target key end

     0   :  { %vm42_vm0 = vcmask 261120   ;;  %s121_s1 = inlined_call_operand.vmem [shape: bf16[32,128], index: 1, kind: input, shape index: {}]   ;;  %s122_s2 = inlined_call_operand.vmem [shape: f32[1,128], index: 2, kind: input, shape index: {}]   ;;  %s123_s0 = inlined_call_operand.vmem [shape: bf16[16,32], index: 0, kind: input, shape index: {}]   ;;  %s124_s3 = inlined_call_operand.vmem [shape: f32[16,128], index: 3, kind: output, shape index: {}]  }
   0x1   :  { %v81_v0 = vld [vmem:[%s121_s1 + $0x8] sm:$0xff]  ;;  %v80_v1 = vld [vmem:[%s121_s1] sm:$0xff] }
   0x2   :  { %52 = vmatpush.bf16.msra.mxu0 %v81_v0  ;;  %v79_v2 = vld [vmem:[%s123_s0] sm:$0xff] }
   0x3   :  { %v82_v3 = vld [vmem:[%s122_s2] ss:$0 sm:$0xff] }
   0x6   :  { %53 = vmatpush.bf16.msra.mxu0 %v80_v1 }
   0x9   :  { %78 = vmatmul.msk.bf16.vlgmr.msra.gmra.mxu0 %vm42_vm0, %v79_v2 }
  0x86   :  { %v55_v4 = vpop.f32.mrf.mxu0 }
  0x87   :  { %v56_v5 = vadd.f32 %v82_v3, %v55_v4 }
  0x89   :  { %60 = vst [vmem:[%s124_s3] sm:$0xff] %v56_v5 }
  0x8e   :  { %v57_v6 = vpop.f32.mrf.mxu0 }
  0x8f   :  { %v58_v7 = vadd.f32 %v82_v3, %v57_v6 }
  0x91   :  { %61 = vst [vmem:[%s124_s3 + $0x8] sm:$0xff] %v58_v7 }

// kernel: bert_moe_forward.2
= control target key start
LH: loop header
LB: loop body
LE: loop exit
PB: predicated region body
PF: predicated region fallthrough
CT: control target
= control target key end

     0   :  { %s4572_s0 = inlined_call_operand.vmem [shape: bf16[2,8,32], index: 0, kind: input, shape index: {}]   ;;  %s4573_s1 = inlined_call_operand.vmem [shape: bf16[8,32], index: 1, kind: input, shape index: {}]   ;;  %s4574_s2 = inlined_call_operand.vmem [shape: bf16[2,8,32], index: 2, kind: input, shape index: {}]   ;;  %s4575_s3 = inlined_call_operand.vmem [shape: f32[1,32], index: 3, kind: input, shape index: {}]   ;;  %s4576_s4 = inlined_call_operand.vmem [shape: f32[1,32], index: 4, kind: input, shape index: {}]   ;;  %s4577_s5 = inlined_call_operand.hbm [shape: bf16[2,12,32,8], index: 5, kind: input, shape index: {}]   ;;  %s4578_s6 = inlined_call_operand.vmem [shape: f32[2,12,1,8], index: 6, kind: input, shape index: {}]   ;;  %s4579_s7 = inlined_call_operand.vmem [shape: bf16[2,4,8,32], index: 7, kind: input, shape index: {}]   ;;  %s4580_s8 = inlined_call_operand.vmem [shape: f32[2,1,32], index: 8, kind: input, shape index: {}, may-alias: {8,10,18,20}]   ;;  %s4581_s9 = inlined_call_operand.vmem [shape: f32[2,1,32], index: 9, kind: input, shape index: {}, may-alias: {9,19}]   ;;  %s4582_s10 = inlined_call_operand.vmem [shape: f32[2,1,32], index: 10, kind: input, shape index: {}, may-alias: {8,10,18,20}]   ;;  %s4583_s11 = inlined_call_operand.vmem [shape: bf16[2,32,6], index: 11, kind: input, shape index: {}]   ;;  %s4584_s12 = inlined_call_operand.vmem [shape: f32[2,1,6], index: 12, kind: input, shape index: {}]   ;;  %s4585_s13 = inlined_call_operand.hbm [shape: bf16[2,6,32,128], index: 13, kind: input, shape index: {}]   ;;  %s4586_s14 = inlined_call_operand.vmem [shape: f32[2,6,1,128], index: 14, kind: input, shape index: {}]   ;;  %s4587_s15 = inlined_call_operand.hbm [shape: bf16[2,6,128,32], index: 15, kind: input, shape index: {}]   ;;  %s4588_s16 = inlined_call_operand.vmem [shape: f32[2,6,1,32], index: 16, kind: input, shape index: {}]   ;;  %s4589_s17 = inlined_call_operand.vmem [shape: bf16[2,32,32], index: 17, kind: input, shape index: {}]   ;;  %s4590_s18 = inlined_call_operand.vmem [shape: f32[2,1,32], index: 18, kind: input, shape index: {}, may-alias: {8,10,18,20}]   ;;  %s4591_s19 = inlined_call_operand.vmem [shape: f32[2,1,32], index: 19, kind: input, shape index: {}, may-alias: {9,19}]   ;;  %s4592_s20 = inlined_call_operand.vmem [shape: f32[2,1,32], index: 20, kind: input, shape index: {}, may-alias: {8,10,18,20}]   ;;  %s4593_s21 = inlined_call_operand.vmem [shape: bf16[2,8,32], index: 21, kind: output, shape index: {}]  }
   0x1   :  { %4603 = sst [smem:[#allocation20_spill]] %s4572_s0 }
   0x2   :  { %4604 = sst [smem:[#allocation21_spill]] %s4573_s1 }
   0x3   :  { %4605 = sst [smem:[#allocation22_spill]] %s4574_s2 }
   0x4   :  { %4606 = sst [smem:[#allocation23_spill]] %s4575_s3 }
   0x5   :  { %4607 = sst [smem:[#allocation24_spill]] %s4576_s4 }
   0x6   :  { %4608 = sst [smem:[#allocation25_spill]] %s4577_s5 }
   0x7   :  { %4609 = sst [smem:[#allocation26_spill]] %s4578_s6 }
   0x8   :  { %4610 = sst [smem:[#allocation27_spill]] %s4579_s7 }
   0x9   :  { %4611 = sst [smem:[#allocation28_spill]] %s4580_s8 }
   0xa   :  { %4612 = sst [smem:[#allocation29_spill]] %s4581_s9 }
   0xb   :  { %4613 = sst [smem:[#allocation30_spill]] %s4582_s10 }
   0xc   :  { %4614 = sst [smem:[#allocation31_spill]] %s4583_s11 }
   0xd   :  { %4615 = sst [smem:[#allocation32_spill]] %s4584_s12 }
   0xe   :  { %4616 = sst [smem:[#allocation33_spill]] %s4585_s13 }
   0xf   :  { %4617 = sst [smem:[#allocation34_spill]] %s4586_s14 }
  0x10   :  { %4618 = sst [smem:[#allocation35_spill]] %s4587_s15 }
  0x11   :  { %4619 = sst [smem:[#allocation36_spill]] %s4588_s16 }
  0x12   :  { %4620 = sst [smem:[#allocation37_spill]] %s4589_s17 }
  0x13   :  { %4621 = sst [smem:[#allocation38_spill]] %s4590_s18 }
  0x14   :  { %4622 = sst [smem:[#allocation39_spill]] %s4591_s19 }
  0x15   :  { %4623 = sst [smem:[#allocation40_spill]] %s4592_s20 }
  0x16   :  { %4624 = sst [smem:[#allocation41_spill]] %s4593_s21 }
  0x17   :  { %26 = vsyncpa [#allocation4], 0 }
  0x18   :  { %28 = vsyncpa [#allocation4 + $0x1], 0 }
  0x19   :  { %29 = vsyncpa [#allocation6], 0 }
  0x1a   :  { %31 = vsyncpa [#allocation6 + $0x1], 0  ;;  %s4038_s2 = smov 0   ;;  %s4040_s25 = smov 0  }
  0x1b   :  { %s4042_s26 = smov 0   ;;  %s4044_s27 = smov 0  }
  0x1c   :  { %s4046_s3 = smov 0   ;;  %s4048_s28 = smov 0  }
  0x1d   :  { %s4050_s29 = smov 0   ;;  %s4052_s0 = smov 0  }
  0x1e LB: > { %4625 = sst [smem:[#allocation10_spill]] %s3891_s25  ;;  %s4596_s4 = sadd.s32 4294967295, %s3915_s0   ;;  %s3915_s0 = sphi %s4052_s0, %s37_s0   ;;  %s3911_s29 = sphi %s4050_s29, %s4683_s29   ;;  %s3907_s28 = sphi %s4048_s28, %s4682_s28   ;;  %s3903_s3 = sphi %s4046_s3, %s4681_s3   ;;  %s3899_s27 = sphi %s4044_s27, %s4680_s27   ;;  %s3895_s26 = sphi %s4042_s26, %s4679_s26   ;;  %s3891_s25 = sphi %s4040_s25, %s4678_s25   ;;  %s3887_s2 = sphi %s4038_s2, %s4677_s2  }
  0x1f   : > { %4626 = sst [smem:[#allocation11_spill]] %s3895_s26  ;;  %s46_s30 = sadd.s32 1, %s3907_s28 }
  0x20   : > { %4627 = sst [smem:[#allocation12_spill]] %s3907_s28  ;;  %p47_p0 = scmp.ge.s32.totalorder %s46_s30, 2 }
  0x21   : > { %4628 = sst [smem:[#allocation13_spill]] %s3911_s29  ;;  %s49_s5 = sadd.s32 1, %s3911_s29 }
  0x22   : > { %4629 = sst [smem:[#allocation14_spill]] %s3915_s0  ;;  %s171_s22 = sadd.s32 1, %s3895_s26 }
  0x23   : > { %p178_p1 = scmp.ne.s32.totalorder %s3895_s26, %s3891_s25  ;;  %s4685_s30 = smov (%p47_p0, %s46_s30), 0 }
  0x24   : > { %4630 = sst [smem:[#allocation15_spill]] %s4685_s30  ;;  %s4687_s5 = smov (!%p47_p0, %s49_s5), %s3911_s29 }
  0x25   : > { %s168_s23 = ssub.s32 %s3907_s28, %s4685_s30  ;;  %p179_p2 = scmp.eq.s32.totalorder %s3915_s0, 0 }
  0x26   : > { %p51_p3 = scmp.ge.s32.totalorder %s4687_s5, 2  ;;  %p169_p4 = scmp.eq.s32.totalorder %s168_s23, 0 }
  0x27   : > { %p180_p5 = por %p179_p2, %p178_p1  ;;  %p184_p6 = scmp.ne.s32.totalorder %s3891_s25, %s3887_s2 }
  0x28   : > { %s4689_s5 = smov (%p51_p3, %s4687_s5), 0  ;;  %p185_p7 = scmp.eq.s32.totalorder %s4596_s4, 0 }
  0x29   : > { %4631 = sst [smem:[#allocation16_spill]] %s4689_s5  ;;  %p3597_p8 = scmp.lt.s32.totalorder %s3915_s0, 4 }
  0x2a   : > { %s4092_s1 = scalar_select %p169_p4, %s3895_s26, %s171_s22  }
  0x2b   : > { %s4098_s24 = sand.u32 1, %s3895_s26   ;;  %p4100_p9 = por %p185_p7, %p184_p6 }
  0x2c   : > { %4632 = sst [smem:[#allocation17_spill]] %s4092_s1  ;;  %p4104_p10 = pnand %p3597_p8, %p180_p5 }
  0x2d   : > { %s716_s2 = sand.u32 1, %s3915_s0   ;;  %s3572_s23 = smul.u32 96, %s4098_s24 }
  0x2e   : > { %s3573_s22 = smul.u32 96, %s3907_s28  ;;  %p3078_p11 = scmp.ge.s32.totalorder %s3915_s0, 1 }
  0x2f   : > { %s720_s4 = scalar_lea.vmem [#allocation5], %s3572_s23  ;;  %s4635_s13 = sld [smem:[#allocation33_spill]] }
  0x30   : > { %s728_s5 = sshll.u32 %s720_s4, 4  ;;  %p798_p12 = scmp.lt.s32.totalorder %s3915_s0, 5  ;;  %s729_s5 = int_to_ptr.vmem [resolvable:$true] %s728_s5 }
  0x31   : > { %s717_s19 = scalar_lea.sflag [#allocation6], %s716_s2  ;;  %s3917_s16 = smov 64  }
  0x32   : > { %s3918_s14 = smov 4   ;;  %p4118_p13 = pnand %p3078_p11, %p798_p12 }
  0x33   : > { %s3570_s4 = smul.u32 192, %s4098_s24  ;;  %s648_s11 = scalar_lea.sflag [#allocation4], %s4098_s24 }
  0x34   : > { %s3571_s18 = smul.u32 192, %s3907_s28  ;;  %s4638_s15 = sld [smem:[#allocation35_spill]] }
  0x35   : > { %s725_s21 = scalar_lea.hbm %s4635_s13, %s3573_s22  ;;  %s3574_s26 = smul.u32 384, %s4098_s24 }
  0x36   : > { %s726_s20 = sshll.u32 %s725_s21, 4  ;;  %s4637_s21 = sld [smem:[#allocation25_spill]]  ;;  %s727_s20 = int_to_ptr.hbm [resolvable:$true] %s726_s20 }
  0x37   : > { %3593 = dma.hbm_to_vmem [thread:$0]  (!%p4104_p10), %s727_s20, 1536, %s729_s5, %s717_s19, %s3917_s16, %s3917_s16, %s3918_s14  }
  0x38   : > { %s651_s17 = scalar_lea.vmem [#allocation3], %s3570_s4  ;;  %s3575_s20 = smul.u32 384, %s3907_s28 }
  0x39   : > { %s659_s12 = sshll.u32 %s651_s17, 4  ;;  %s749_s5 = scalar_lea.vmem [#allocation7], %s3574_s26  ;;  %s660_s12 = int_to_ptr.vmem [resolvable:$true] %s659_s12 }
  0x3a   : > { %s757_s10 = sshll.u32 %s749_s5, 4  ;;  %s754_s8 = scalar_lea.hbm %s4638_s15, %s3575_s20  ;;  %s758_s10 = int_to_ptr.vmem [resolvable:$true] %s757_s10 }
  0x3b   : > { %s755_s7 = sshll.u32 %s754_s8, 4  ;;  %802 = sbr.rel (%p4118_p13) target bundleno = 2898 (0xb52), region = 104  ;;  %s756_s7 = int_to_ptr.hbm [resolvable:$true] %s755_s7 }
  0x3c   : > { %s656_s13 = scalar_lea.hbm %s4637_s21, %s3571_s18 }
  0x3d   : > { %s657_s2 = sshll.u32 %s656_s13, 4  ;;  %s658_s2 = int_to_ptr.hbm [resolvable:$true] %s657_s2 }
  0x3e   : > { %3590 = dma.hbm_to_vmem [thread:$0]  (!%p4104_p10), %s658_s2, 3072, %s660_s12, %s648_s11, %s3917_s16, %s3917_s16, %s3918_s14  }
  0x3f   : > { %3596 = dma.hbm_to_vmem [thread:$0]  (!%p4104_p10), %s756_s7, 6144, %s758_s10, %s717_s19, %s3917_s16, %s3917_s16, %s3918_s14  }
  0x40   : > { %s4140_s13 = sand.u32 1, %s3891_s25  }
  0x41   : > { %s3576_s11 = smul.u32 192, %s4140_s13  ;;  %s805_s12 = scalar_lea.sflag [#allocation4], %s4140_s13 }
  0x43   : > { %s4144_s17 = scalar_lea.vmem [#allocation3], %s3576_s11 }
  0x44   : > { %3878 = dma.done.wait (%p4100_p9), %s805_s12, 3072  }
  0x45   : > { %3880 = vsyncadd (%p4100_p9), %s805_s12, 4294964224  ;;  %s4639_s6 = sadd.s32 4294967295, %s3915_s0   ;;  %s3577_s8 = smul.u32 96, %s4140_s13 }
  0x46   : > { %s814_s7 = sand.u32 1, %s4639_s6  }
  0x47   : > { %s815_s9 = scalar_lea.sflag [#allocation6], %s814_s7  ;;  %s4153_s10 = scalar_lea.vmem [#allocation5], %s3577_s8 }
  0x48   : > { %4640 = sst [smem:[#allocation18_spill]] %s4153_s10 }
  0x49   : > { %3882 = dma.done.wait (%p4100_p9), %s815_s9, 7680  }
  0x4a   : > { %3884 = vsyncadd (%p4100_p9), %s815_s9, 4294959616  ;;  %s3578_s14 = smul.u32 384, %s4140_s13  ;;  %p953_p0 = scmp.lt.s32.totalorder %s3903_s3, 1 }
  0x4b   : > { %p961_p1 = scmp.lt.s32.totalorder %s3899_s27, 1  ;;  %s4641_s30 = sld [smem:[#allocation20_spill]] }
  0x4c   : > { %s4691_s3 = smov (!%p953_p0, %s3903_s3), 1  ;;  %s4642_s26 = sld [smem:[#allocation22_spill]] }
  0x4d   : > { %s4164_s16 = scalar_select %p961_p1, %s3899_s27, 1 }
  0x4e   : > { %s4166_s18 = sshll.u32 %s4691_s3, 2  ;;  %s4643_s5 = sld [smem:[#allocation27_spill]] }
  0x4f   : > { %s3579_s22 = smul.u32 12, %s4164_s16  ;;  %s3479_s21 = sshll.u32 %s4164_s16, 4 }
  0x50   : > { %s4645_s9 = sld [smem:[#allocation26_spill]]  ;;  %s3580_s7 = smul.u32 6, %s4164_s16 }
  0x51   : > { %s956_s24 = scalar_lea.vmem %s4641_s30, %s4166_s18  ;;  %s4653_s25 = sld [smem:[#allocation34_spill]] }
  0x52   : > { %s960_s1 = scalar_lea.vmem %s4642_s26, %s4166_s18  ;;  %s4654_s4 = sld [smem:[#allocation36_spill]] }
  0x53   : > { %s4655_s6 = sld [smem:[#allocation39_spill]]  ;;  %s4241_s28 = scalar_lea.vmem [#allocation7], %s3578_s14 }
  0x54   : > { %s4181_s3 = scalar_lea.vmem %s4643_s5, %s3479_s21  ;;  %s4648_s5 = sld [smem:[#allocation31_spill]] }
  0x55   : > { %s4657_s23 = sld [smem:[#allocation41_spill]]  ;;  %p3088_p2 = scmp.ne.s32.totalorder %s3899_s27, 0 }
  0x56   : > { %s4190_s19 = scalar_lea.vmem %s4645_s9, %s3579_s22  ;;  %s4650_s9 = sld [smem:[#allocation37_spill]] }
  0x57   : > { %s4222_s2 = scalar_lea.vmem %s4653_s25, %s3580_s7  ;;  %s4660_s20 = sld [smem:[#allocation24_spill]] (!%p3088_p2) }
  0x58   : > { %s4227_s13 = scalar_lea.vmem %s4654_s4, %s3580_s7  ;;  %s4658_s7 = sld [smem:[#allocation21_spill]] (!%p3088_p2) }
  0x59   : > { %s1005_s22 = scalar_lea.vmem %s4655_s6, %s4164_s16 }
  0x5a   : > { %s4203_s0 = scalar_lea.vmem %s4648_s5, %s3479_s21 }
  0x5b   : > { %s1012_s15 = scalar_lea.vmem %s4657_s23, %s4166_s18 }
  0x5c   : > { %s4213_s10 = scalar_lea.vmem %s4650_s9, %s3479_s21  ;;  %s4656_s9 = sld [smem:[#allocation40_spill]] }
  0x5d   : > { %4651 = sst [smem:[#allocation19_spill]] %s4213_s10 }
  0x5e   : > { %1017 = sbr.rel (%p3088_p2) target bundleno = 376 (0x178), region = 120 }
  0x62   : > { %s1008_s10 = scalar_lea.vmem %s4656_s9, %s4164_s16 }
  0x63   : > { %v1018_v0 = vld [vmem:[%s956_s24] sm:$0xf]  ;;  %vm1028_vm0 = vcmask 261120   ;;  %v3919_v9 = vmov 32.0  }
  0x64   : > { %v1020_v1 = vld [vmem:[%s4658_s7] sm:$0xf]  ;;  %v1019_v3 = vunpack.c.l.bf16 %v1018_v0  ;;  %3675 = vrcp.f32 %v3919_v9 }
  0x65   : > { %v1023_v2 = vld [vmem:[%s960_s1] sm:$0xf]  ;;  %v1021_v4 = vunpack.c.l.bf16 %v1020_v1  ;;  %s4659_s1 = sld [smem:[#allocation23_spill]] }
  0x66   : > { %v1024_v5 = vunpack.c.l.bf16 %v1023_v2  ;;  %v3674_v32 = vld [vmem:[%s4660_s20] ss:$0 sm:$0xff] }
  0x67   : > { %v1022_v6 = vadd.f32 %v1021_v4, %v1019_v3 }
  0x69   : > { %v1025_v7 = vadd.f32 %v1024_v5, %v1022_v6 }
  0x6a   : > { %v3676_v10 = vpop.eup %3675 }
  0x6b   : > { %v1029_v8 = vsel %vm1028_vm0, %v1025_v7, 0.0  ;;  %v1033_v11 = vmul.f32 32.0, %v3676_v10  ;;  %vm1037_vm1 = vweird.f32 %v3676_v10  ;;  %v3673_v30 = vld [vmem:[%s4659_s1] ss:$0 sm:$0xff] }
  0x6c   : > { %1030 = vadd.xlane.f32.xlu0 %v1029_v8 }
  0x6d   : > { %v1034_v12 = vsub.f32 1.0, %v1033_v11 }
  0x6f   : > { %v1035_v13 = vmul.f32 %v3676_v10, %v1034_v12 }
  0x71   : > { %v1036_v14 = vadd.f32 %v3676_v10, %v1035_v13 }
  0x73   : > { %v1038_v15 = vsel %vm1037_vm1, %v3676_v10, %v1036_v14 }
  0xdf   : > { %v1031_v16 = vpop.xlane.xlu0 %1030 }
  0xe0   : > { %v1039_v17 = vmul.f32 %v1038_v15, %v1031_v16 }
  0xe2   : > { %v1040_v18 = vsub.f32 %v1025_v7, %v1039_v17 }
  0xe4   : > { %v1041_v19 = vmul.f32 %v1040_v18, %v1040_v18 }
  0xe6   : > { %v1042_v20 = vsel %vm1028_vm0, %v1041_v19, 0.0 }
  0xe7   : > { %1043 = vadd.xlane.f32.xlu0 %v1042_v20 }
 0x15a   : > { %v1044_v21 = vpop.xlane.xlu0 %1043 }
 0x15b   : > { %v1045_v22 = vmul.f32 %v1044_v21, %v1038_v15 }
 0x15d   : > { %v1046_v23 = vadd.f32 1e-12, %v1045_v22 }
 0x15f   : > { %3677 = vrsqrt.f32 %v1046_v23  ;;  %vm1053_vm3 = vweird.f32 %v1046_v23 }
 0x165   : > { %v3678_v24 = vpop.eup %3677 }
 0x166   : > { %v1048_v25 = vmul.f32 %v3678_v24, %v1046_v23  ;;  %vm1054_vm2 = vweird.f32 %v3678_v24 }
 0x167   : > { %vm1055_vm4 = vmor %vm1053_vm3, %vm1054_vm2 }
 0x168   : > { %v1049_v26 = vmul.f32 %v3678_v24, %v1048_v25 }
 0x16a   : > { %v1050_v27 = vmul.f32 0.5, %v1049_v26 }
 0x16c   : > { %v1051_v28 = vsub.f32 1.5, %v1050_v27 }
 0x16e   : > { %v1052_v29 = vmul.f32 %v3678_v24, %v1051_v28 }
 0x170   : > { %v1056_v31 = vsel %vm1055_vm4, %v3678_v24, %v1052_v29 }
 0x171   : > { %v1057_v33 = vmul.f32 %v1056_v31, %v1040_v18 }
 0x173   : > { %v1061_v34 = vmul.f32 %v3673_v30, %v1057_v33 }
 0x175   : > { %v1065_v35 = vadd.f32 %v3674_v32, %v1061_v34 }
 0x177   : > { %1066 = vst.msk [vmem:[#allocation2] sm:$0xff] %vm1028_vm0, %v1065_v35 }
 0x178 PF: > { %v3483_v36 = vld [vmem:[%s4144_s17 + $0x8] sm:$0xff]  ;;  %v3485_v37 = vld [vmem:[%s4144_s17 + $0x18] sm:$0xff]  ;;  %v3482_v40 = vld [vmem:[%s4144_s17] sm:$0xff]  ;;  %vm1177_vm5 = vcmask 261120   ;;  %vm1477_vm6 = vcmask 64512   ;;  %vm1613_vm7 = vcmask 1043456  }
 0x179   : > { %v3489_v38 = vld [vmem:[%s4144_s17 + $0x38] sm:$0xff]  ;;  %v3491_v39 = vld [vmem:[%s4144_s17 + $0x48] sm:$0xff]  ;;  %1187 = vmatpush.bf16.msra.mxu2 %v3483_v36  ;;  %1212 = vmatpush.bf16.msra.mxu1 %v3485_v37  ;;  %v3484_v41 = vld [vmem:[%s4144_s17 + $0x10] sm:$0xff]  ;;  %s4663_s11 = sld [smem:[#allocation18_spill]]  ;;  %vm1862_vm12 = vcmask 48128   ;;  %p3476_p3 = scmp.ne.s32.totalorder %s3899_s27, 1 }
 0x17a   : > { %1262 = vmatpush.bf16.msra.mxu3 %v3489_v38  ;;  %1287 = vmatpush.bf16.msra.mxu0 %v3491_v39  ;;  %v3488_v43 = vld [vmem:[%s4144_s17 + $0x30] sm:$0xff]  ;;  %v3490_v44 = vld [vmem:[%s4144_s17 + $0x40] sm:$0xff]  ;;  %v3487_v45 = vld [vmem:[%s4144_s17 + $0x28] sm:$0xff]  ;;  %s4664_s21 = sld [smem:[#allocation29_spill]] }
 0x17b   : > { %v3493_v46 = vld [vmem:[%s4144_s17 + $0x58] sm:$0xff]  ;;  %v3486_v49 = vld [vmem:[%s4144_s17 + $0x20] sm:$0xff]  ;;  %v3492_v50 = vld [vmem:[%s4144_s17 + $0x50] sm:$0xff]  ;;  %s4666_s30 = sld [smem:[#allocation30_spill]] }
 0x17c   : > { %v3497_v48 = vld [vmem:[%s4144_s17 + $0x78] sm:$0xff]  ;;  %v3496_v51 = vld [vmem:[%s4144_s17 + $0x70] sm:$0xff]  ;;  %v3495_v52 = vld [vmem:[%s4144_s17 + $0x68] sm:$0xff]  ;;  %s4668_s7 = sld [smem:[#allocation32_spill]] }
 0x17d   : > { %1188 = vmatpush.bf16.msra.mxu2 %v3482_v40  ;;  %1213 = vmatpush.bf16.msra.mxu1 %v3484_v41  ;;  %v3499_v53 = vld [vmem:[%s4144_s17 + $0x88] sm:$0xff]  ;;  %v3498_v54 = vld [vmem:[%s4144_s17 + $0x80] sm:$0xff]  ;;  %v3501_v56 = vld [vmem:[%s4144_s17 + $0x98] sm:$0xff]  ;;  %s4671_s1 = sld [smem:[#allocation38_spill]] }
 0x17e   : > { %v4262_v42 = vld [vmem:[#allocation2] sm:$0xff]  ;;  %1263 = vmatpush.bf16.msra.mxu3 %v3488_v43  ;;  %1288 = vmatpush.bf16.msra.mxu0 %v3490_v44  ;;  %v3494_v55 = vld [vmem:[%s4144_s17 + $0x60] sm:$0xff]  ;;  %v3500_v57 = vld [vmem:[%s4144_s17 + $0x90] sm:$0xff] }
 0x17f   : > { %v1068_v47 = vpack.c.bf16 %v4262_v42, %v4262_v42  ;;  %v3505_v58 = vld [vmem:[%s4144_s17 + $0xb8] sm:$0xff]  ;;  %v3504_v59 = vld [vmem:[%s4144_s17 + $0xb0] sm:$0xff]  ;;  %v3503_v60 = vld [vmem:[%s4144_s17 + $0xa8] sm:$0xff] }
 0x180   : > { %v3502_v61 = vld [vmem:[%s4144_s17 + $0xa0] sm:$0xff]  ;;  %v3687_v62 = vld [vmem:[%s4190_s19 + $0x4] ss:$0 sm:$0xff]  ;;  %v3688_v3 = vld [vmem:[%s4190_s19] ss:$0 sm:$0xff]  ;;  %s4665_s8 = scalar_lea.vmem %s4664_s21, %s4164_s16 }
 0x181   : > { %1237 = vmatpush.bf16.msrb.mxu2 %v3487_v45  ;;  %1312 = vmatpush.bf16.msrb.mxu1 %v3493_v46  ;;  %v3690_v11 = vld [vmem:[%s4190_s19 + $0x5] ss:$0 sm:$0xff]  ;;  %v3686_v15 = vld [vmem:[%s4190_s19 + $0x1] ss:$0 sm:$0xff]  ;;  %v3694_v18 = vld [vmem:[%s4190_s19 + $0x8] ss:$0 sm:$0xff]  ;;  %s4667_s23 = scalar_lea.vmem %s4666_s30, %s4164_s16 }
 0x182   : > { %3097 = vmatmul.msk.bf16.vlgmr.msra.gmra.mxu2 %vm1177_vm5, %v1068_v47  ;;  %3106 = vmatmul.msk.bf16.vlgmr.msra.gmra.mxu1 %vm1177_vm5, %v1068_v47  ;;  %v3692_v20 = vld [vmem:[%s4190_s19 + $0x7] ss:$0 sm:$0xff]  ;;  %v3689_v27 = vld [vmem:[%s4190_s19 + $0x3] ss:$0 sm:$0xff]  ;;  %v3693_v39 = vld [vmem:[%s4190_s19 + $0x6] ss:$0 sm:$0xff]  ;;  %s4669_s14 = scalar_lea.vmem %s4668_s7, %s4164_s16 }
 0x183   : > { %3124 = vmatmul.msk.bf16.vlgmr.msra.gmra.mxu3 %vm1177_vm5, %v1068_v47  ;;  %3133 = vmatmul.msk.bf16.vlgmr.msra.gmra.mxu0 %vm1177_vm5, %v1068_v47  ;;  %v3691_v43 = vld [vmem:[%s4190_s19 + $0x2] ss:$0 sm:$0xff]  ;;  %s4672_s6 = scalar_lea.vmem %s4671_s1, %s4164_s16 }
 0x184   : > { %1362 = vmatpush.bf16.msrb.mxu3 %v3497_v48  ;;  %1387 = vmatpush.bf16.msrb.mxu0 %v3499_v53 }
 0x185   : > { %1238 = vmatpush.bf16.msrb.mxu2 %v3486_v49  ;;  %1313 = vmatpush.bf16.msrb.mxu1 %v3492_v50  ;;  %v3695_v49 = vld [vmem:[%s4190_s19 + $0x9] ss:$0 sm:$0xff] }
 0x188   : > { %1363 = vmatpush.bf16.msrb.mxu3 %v3496_v51  ;;  %1388 = vmatpush.bf16.msrb.mxu0 %v3498_v54 }
 0x189   : > { %1337 = vmatpush.bf16.msra.mxu2 %v3495_v52  ;;  %1412 = vmatpush.bf16.msra.mxu1 %v3501_v56 }
 0x18c   : > { %1462 = vmatpush.bf16.msra.mxu3 %v3505_v58 }
 0x18d   : > { %1338 = vmatpush.bf16.msra.mxu2 %v3494_v55  ;;  %1413 = vmatpush.bf16.msra.mxu1 %v3500_v57  ;;  %v3696_v55 = vld [vmem:[%s4190_s19 + $0xb] ss:$0 sm:$0xff] }
 0x190   : > { %1463 = vmatpush.bf16.msra.mxu3 %v3504_v59 }
 0x192   : > { %3115 = vmatmul.msk.bf16.vlgmr.msrb.gmra.mxu2 %vm1177_vm5, %v1068_v47  ;;  %3142 = vmatmul.msk.bf16.vlgmr.msrb.gmra.mxu1 %vm1177_vm5, %v1068_v47 }
 0x193   : > { %3160 = vmatmul.msk.bf16.vlgmr.msrb.gmra.mxu3 %vm1177_vm5, %v1068_v47  ;;  %3169 = vmatmul.msk.bf16.vlgmr.msrb.gmra.mxu0 %vm1177_vm5, %v1068_v47 }
 0x194   : > { %1437 = vmatpush.bf16.msrb.mxu2 %v3503_v60  ;;  %v3697_v60 = vld [vmem:[%s4190_s19 + $0xa] ss:$0 sm:$0xff]  ;;  %s4661_s19 = sld [smem:[#allocation28_spill]] }
 0x198   : > { %1438 = vmatpush.bf16.msrb.mxu2 %v3502_v61 }
 0x19a   : > { %s4662_s5 = scalar_lea.vmem %s4661_s19, %s4164_s16 }
 0x1a2   : > { %3151 = vmatmul.msk.bf16.vlgmr.msra.gmra.mxu2 %vm1177_vm5, %v1068_v47  ;;  %3178 = vmatmul.msk.bf16.vlgmr.msra.gmra.mxu1 %vm1177_vm5, %v1068_v47 }
 0x1a3   : > { %3196 = vmatmul.msk.bf16.vlgmr.msra.gmra.mxu3 %vm1177_vm5, %v1068_v47 }
 0x1b2   : > { %3187 = vmatmul.msk.bf16.vlgmr.msrb.gmra.mxu2 %vm1177_vm5, %v1068_v47 }
 0x1ff   : > { %v1215_v63 = vpop.f32.mrf.mxu1 }
 0x200   : > { %v1290_v0 = vpop.f32.mrf.mxu0  ;;  %v1216_v21 = vadd.f32 %v3686_v15, %v1215_v63 }
 0x201   : > { %v1291_v1 = vadd.f32 %v3687_v62, %v1290_v0 }
 0x202   : > { %v1470_v30 = vpack.c.bf16 %v1216_v21, %v1216_v21 }
 0x203   : > { %v1473_v2 = vpack.c.bf16 %v1291_v1, %v1291_v1 }
 0x205   : > { %v1482_v4 = vsel %vm1477_vm6, %v1473_v2, 0  ;;  %v1190_v5 = vpop.f32.mrf.mxu2 }
 0x206   : > { %v1265_v6 = vpop.f32.mrf.mxu3  ;;  %1491 = vmatpush.bf16.xpose.msra.mxu0 %v1482_v4  ;;  %v1191_v7 = vadd.f32 %v3688_v3, %v1190_v5 }
 0x207   : > { %v1217_v8 = vpop.f32.mrf.mxu1  ;;  %v1266_v34 = vadd.f32 %v3689_v27, %v1265_v6 }
 0x208   : > { %v1292_v9 = vpop.f32.mrf.mxu0  ;;  %v1469_v10 = vpack.c.bf16 %v1191_v7, %v1191_v7 }
 0x209   : > { %v1472_v38 = vpack.c.bf16 %v1266_v34, %v1266_v34 }
 0x20d   : > { %3197 = vmatmul.msk.bf16.vlgmr.msra.gmra.mxu0 %vm1477_vm6, %v1469_v10  ;;  %v1192_v12 = vpop.f32.mrf.mxu2 }
 0x20e   : > { %v1267_v13 = vpop.f32.mrf.mxu3 }
 0x20f   : > { %v1315_v14 = vpop.f32.mrf.mxu1 }
 0x210   : > { %v1316_v16 = vadd.f32 %v3690_v11, %v1315_v14  ;;  %v1390_v19 = vpop.f32.mrf.mxu0 }
 0x211   : > { %v1391_v23 = vadd.f32 %v3694_v18, %v1390_v19 }
 0x212   : > { %v1474_v17 = vpack.c.bf16 %v1316_v16, %v1316_v16 }
 0x213   : > { %v1606_v26 = vpack.c.bf16 %v1391_v23, %v1391_v23 }
 0x214   : > { %v1501_v22 = vsel %vm1477_vm6, %v1474_v17, 0 }
 0x215   : > { %v1240_v24 = vpop.f32.mrf.mxu2  ;;  %1510 = vmatpush.bf16.xpose.msrb.mxu1 %v1501_v22  ;;  %v1615_v31 = vsel %vm1613_vm7, %v1606_v26, 0 }
 0x216   : > { %v1365_v25 = vpop.f32.mrf.mxu3  ;;  %1624 = vmatpush.bf16.msrb.mxu0 %v1615_v31  ;;  %v1241_v46 = vadd.f32 %v3691_v43, %v1240_v24 }
 0x217   : > { %v1366_v28 = vadd.f32 %v3692_v20, %v1365_v25  ;;  %v1317_v29 = vpop.f32.mrf.mxu1 }
 0x218   : > { %v1392_v33 = vpop.f32.mrf.mxu0  ;;  %v1471_v48 = vpack.c.bf16 %v1241_v46, %v1241_v46 }
 0x219   : > { %v1476_v32 = vpack.c.bf16 %v1366_v28, %v1366_v28 }
 0x21b   : > { %v1539_v35 = vsel %vm1477_vm6, %v1476_v32, 0 }
 0x21c   : > { %1548 = vmatpush.bf16.xpose.msrb.mxu3 %v1539_v35  ;;  %3198 = vmatmul.msk.bf16.vlgmr.msrb.gmra.mxu1 %vm1477_vm6, %v1470_v30 }
 0x21d   : > { %v1242_v36 = vpop.f32.mrf.mxu2 }
 0x21e   : > { %v1367_v37 = vpop.f32.mrf.mxu3 }
 0x21f   : > { %v1415_v50 = vpop.f32.mrf.mxu1 }
 0x220   : > { %v1416_v51 = vadd.f32 %v3695_v49, %v1415_v50 }
 0x222   : > { %v1607_v52 = vpack.c.bf16 %v1416_v51, %v1416_v51 }
 0x223   : > { %3200 = vmatmul.msk.bf16.vlgmr.msrb.gmra.mxu3 %vm1477_vm6, %v1472_v38 }
 0x224   : > { %v1634_v53 = vsel %vm1613_vm7, %v1607_v52, 0 }
 0x225   : > { %v1340_v40 = vpop.f32.mrf.mxu2  ;;  %1643 = vmatpush.bf16.msra.mxu1 %v1634_v53 }
 0x226   : > { %v1341_v41 = vadd.f32 %v3693_v39, %v1340_v40  ;;  %v1465_v56 = vpop.f32.mrf.mxu3 }
 0x227   : > { %v1417_v54 = vpop.f32.mrf.mxu1  ;;  %v1466_v57 = vadd.f32 %v3696_v55, %v1465_v56  ;;  %v1691_v56 = vld [vmem:[%s4181_s3] sm:$0xf] }
 0x228   : > { %v1475_v44 = vpack.c.bf16 %v1341_v41, %v1341_v41 }
 0x229   : > { %v1609_v58 = vpack.c.bf16 %v1466_v57, %v1466_v57  ;;  %v1699_v57 = vsel %vm1613_vm7, %v1691_v56, 0 }
 0x22a   : > { %v1520_v45 = vsel %vm1477_vm6, %v1475_v44, 0  ;;  %1708 = vmatpush.bf16.msra.mxu0 %v1699_v57  ;;  %v3514_v57 = vld [vmem:[%s4663_s11 + $0x30] sm:$0xff] }
 0x22b   : > { %1529 = vmatpush.bf16.xpose.msra.mxu2 %v1520_v45  ;;  %v1672_v59 = vsel %vm1613_vm7, %v1609_v58, 0  ;;  %v1692_v58 = vld [vmem:[%s4181_s3 + $0x4] sm:$0xf] }
 0x22c   : > { %1681 = vmatpush.bf16.msra.mxu3 %v1672_v59  ;;  %v1718_v59 = vsel %vm1613_vm7, %v1692_v58, 0  ;;  %v3516_v58 = vld [vmem:[%s4663_s11 + $0x40] sm:$0xff] }
 0x22d   : > { %v1342_v47 = vpop.f32.mrf.mxu2  ;;  %1727 = vmatpush.bf16.msrb.mxu1 %v1718_v59  ;;  %v3518_v59 = vld [vmem:[%s4663_s11 + $0x50] sm:$0xff] }
 0x22e   : > { %v1467_v61 = vpop.f32.mrf.mxu3 }
 0x232   : > { %3199 = vmatmul.msk.bf16.vlgmr.msra.gmra.mxu2 %vm1477_vm6, %v1471_v48 }
 0x235   : > { %v1440_v62 = vpop.f32.mrf.mxu2 }
 0x236   : > { %v1441_v63 = vadd.f32 %v3697_v60, %v1440_v62 }
 0x238   : > { %v1608_v0 = vpack.c.bf16 %v1441_v63, %v1441_v63 }
 0x23a   : > { %v1653_v1 = vsel %vm1613_vm7, %v1608_v0, 0 }
 0x23b   : > { %1662 = vmatpush.bf16.msrb.mxu2 %v1653_v1  ;;  %v1693_v1 = vld [vmem:[%s4181_s3 + $0x8] sm:$0xf] }
 0x23d   : > { %v1442_v2 = vpop.f32.mrf.mxu2 }
 0x23e   : > { %v1737_v2 = vsel %vm1613_vm7, %v1693_v1, 0  ;;  %v3527_v1 = vld [vmem:[%s4241_s28 + $0x38] sm:$0xff] }
 0x23f   : > { %1746 = vmatpush.bf16.msra.mxu2 %v1737_v2 }
 0x28a   : > { %v1493_v3 = vpop.f32.mrf.mxu0 }
 0x28b   : > { %v1554_v4 = vmul.f32 0.35355338, %v1493_v3  ;;  %v1694_v3 = vld [vmem:[%s4181_s3 + $0xc] sm:$0xf] }
 0x28d   : > { %v1558_v5 = vsel %vm1477_vm6, %v1554_v4, -inf }
 0x28e   : > { %1559 = vmax.xlane.f32.xlu1 %v1558_v5 }
 0x292   : > { %v1495_v6 = vpop.f32.mrf.mxu0 }
 0x299   : > { %v1512_v7 = vpop.f32.mrf.mxu1 }
 0x29a   : > { %v1555_v8 = vmul.f32 0.35355338, %v1512_v7 }
 0x29c   : > { %v1561_v9 = vsel %vm1477_vm6, %v1555_v8, -inf }
 0x29d   : > { %1562 = vmax.xlane.f32.xlu1 %v1561_v9 }
 0x2a1   : > { %v1514_v10 = vpop.f32.mrf.mxu1 }
 0x2a6   : > { %v1550_v11 = vpop.f32.mrf.mxu3 }
 0x2a7   : > { %v1557_v16 = vmul.f32 0.35355338, %v1550_v11 }
 0x2a9   : > { %v1567_v18 = vsel %vm1477_vm6, %v1557_v16, -inf }
 0x2ae   : > { %v1552_v12 = vpop.f32.mrf.mxu3 }
 0x2b5   : > { %v1531_v13 = vpop.f32.mrf.mxu2 }
 0x2b6   : > { %v1556_v14 = vmul.f32 0.35355338, %v1531_v13 }
 0x2b8   : > { %v1564_v15 = vsel %vm1477_vm6, %v1556_v14, -inf }
 0x2b9   : > { %1565 = vmax.xlane.f32.xlu0 %v1564_v15 }
 0x2bd   : > { %v1533_v17 = vpop.f32.mrf.mxu2 }
 0x2c1   : > { %1568 = vmax.xlane.f32.xlu0 %v1567_v18 }
 0x301   : > { %v1560_v19 = vpop.xlane.xlu1 %1559 }
 0x302   : > { %v1570_v20 = vsub.f32 %v1554_v4, %v1560_v19  ;;  %v1756_v4 = vsel %vm1613_vm7, %v1694_v3, 0  ;;  %v3526_v3 = vld [vmem:[%s4241_s28 + $0x30] sm:$0xff] }
 0x303   : > { %1765 = vmatpush.bf16.msrb.mxu3 %v1756_v4  ;;  %v3699_v4 = vld [vmem:[%s4665_s8] ss:$0 sm:$0xff] }
 0x304   : > { %v1574_v21 = vmul.f32 1.442695, %v1570_v20 }
 0x306   : > { %3717 = vpow2.f32 %v1574_v21 }
 0x30c   : > { %v3718_v22 = vpop.eup %3717 }
 0x30d   : > { %v1582_v23 = vsel %vm1477_vm6, %v3718_v22, 0.0 }
 0x30e   : > { %1583 = vadd.xlane.f32.xlu0 %v1582_v23 }
 0x310   : > { %v1563_v24 = vpop.xlane.xlu1 %1562 }
 0x311   : > { %v1571_v25 = vsub.f32 %v1555_v8, %v1563_v24  ;;  %v3698_v24 = vld [vmem:[%s4662_s5] ss:$0 sm:$0xff] }
 0x313   : > { %v1576_v26 = vmul.f32 1.442695, %v1571_v25 }
 0x315   : > { %3719 = vpow2.f32 %v1576_v26 }
 0x31b   : > { %v3720_v27 = vpop.eup %3719 }
 0x31c   : > { %v1585_v28 = vsel %vm1477_vm6, %v3720_v27, 0.0 }
 0x31d   : > { %1586 = vadd.xlane.f32.xlu1 %v1585_v28 }
 0x32c   : > { %v1566_v29 = vpop.xlane.xlu0 %1565 }
 0x32d   : > { %v1572_v30 = vsub.f32 %v1556_v14, %v1566_v29 }
 0x32f   : > { %v1578_v31 = vmul.f32 1.442695, %v1572_v30  ;;  %v3920_v30 = vmov 32.0  }
 0x331   : > { %3721 = vpow2.f32 %v1578_v31 }
 0x334   : > { %v1569_v32 = vpop.xlane.xlu0 %1568 }
 0x335   : > { %v1573_v33 = vsub.f32 %v1557_v16, %v1569_v32 }
 0x337   : > { %v3722_v34 = vpop.eup %3721  ;;  %v1580_v35 = vmul.f32 1.442695, %v1573_v33 }
 0x338   : > { %v1588_v36 = vsel %vm1477_vm6, %v3722_v34, 0.0 }
 0x339   : > { %3723 = vpow2.f32 %v1580_v35  ;;  %1589 = vadd.xlane.f32.xlu2 %v1588_v36 }
 0x33f   : > { %v3724_v37 = vpop.eup %3723 }
 0x340   : > { %v1591_v38 = vsel %vm1477_vm6, %v3724_v37, 0.0 }
 0x341   : > { %1592 = vadd.xlane.f32.xlu2 %v1591_v38 }
 0x381   : > { %v1584_v39 = vpop.xlane.xlu0 %1583 }
 0x382   : > { %3725 = vrcp.f32 %v1584_v39 }
 0x388   : > { %v3726_v40 = vpop.eup %3725 }
 0x389   : > { %v1598_v41 = vmul.f32 %v3726_v40, %v3718_v22 }
 0x38b   : > { %v1602_v43 = vpack.c.bf16 %v1598_v41, %v1598_v41 }
 0x38d   : > { %3201 = vmatmul.msk.bf16.vlgmr.msrb.gmra.mxu0 %vm1477_vm6, %v1602_v43  ;;  %v3507_v43 = vld [vmem:[%s4203_s0 + $0x8] sm:$0xff] }
 0x38e   : > { %1853 = vmatpush.bf16.msrb.mxu0 %v3507_v43  ;;  %v3537_v43 = vld [vmem:[%s4241_s28 + $0x88] sm:$0xff] }
 0x390   : > { %v1587_v44 = vpop.xlane.xlu1 %1586 }
 0x391   : > { %3727 = vrcp.f32 %v1587_v44  ;;  %v3509_v44 = vld [vmem:[%s4663_s11 + $0x8] sm:$0xff] }
 0x397   : > { %v3728_v45 = vpop.eup %3727 }
 0x398   : > { %v1599_v46 = vmul.f32 %v3728_v45, %v3720_v27  ;;  %v3511_v45 = vld [vmem:[%s4663_s11 + $0x18] sm:$0xff] }
 0x39a   : > { %v1603_v47 = vpack.c.bf16 %v1599_v46, %v1599_v46  ;;  %v3513_v46 = vld [vmem:[%s4663_s11 + $0x28] sm:$0xff] }
 0x39c   : > { %3202 = vmatmul.msk.bf16.vlgmr.msra.gmra.mxu1 %vm1477_vm6, %v1603_v47  ;;  %v3506_v47 = vld [vmem:[%s4203_s0] sm:$0xff] }
 0x39d   : > { %2000 = vmatpush.bf16.msra.mxu1 %v3509_v44  ;;  %1854 = vmatpush.bf16.msrb.mxu0 %v3506_v47  ;;  %v3565_v44 = vld [vmem:[%s4241_s28 + $0x168] sm:$0xff]  ;;  %v3547_v47 = vld [vmem:[%s4241_s28 + $0xd8] sm:$0xff] }
 0x3ac   : > { %v1590_v48 = vpop.xlane.xlu2 %1589 }
 0x3ad   : > { %3729 = vrcp.f32 %v1590_v48  ;;  %v3508_v48 = vld [vmem:[%s4663_s11] sm:$0xff] }
 0x3ae   : > { %2001 = vmatpush.bf16.msra.mxu1 %v3508_v48  ;;  %v3555_v48 = vld [vmem:[%s4241_s28 + $0x118] sm:$0xff] }
 0x3b3   : > { %v3730_v49 = vpop.eup %3729 }
 0x3b4   : > { %v1600_v50 = vmul.f32 %v3730_v49, %v3722_v34  ;;  %v1593_v51 = vpop.xlane.xlu2 %1592  ;;  %v3510_v49 = vld [vmem:[%s4663_s11 + $0x10] sm:$0xff] }
 0x3b5   : > { %3731 = vrcp.f32 %v1593_v51 }
 0x3b6   : > { %v1604_v52 = vpack.c.bf16 %v1600_v50, %v1600_v50  ;;  %3733 = vrcp.f32 %v3920_v30  ;;  %v3512_v50 = vld [vmem:[%s4663_s11 + $0x20] sm:$0xff]  ;;  %v3550_v30 = vld [vmem:[%s4241_s28 + $0xf0] sm:$0xff] }
 0x3b8   : > { %3203 = vmatmul.msk.bf16.vlgmr.msrb.gmra.mxu2 %vm1477_vm6, %v1604_v52 }
 0x3b9   : > { %2025 = vmatpush.bf16.msrb.mxu2 %v3511_v45  ;;  %v3701_v45 = vld [vmem:[%s4669_s14] ss:$0 sm:$0xff] }
 0x3bb   : > { %v3732_v53 = vpop.eup %3731 }
 0x3bc   : > { %v1601_v54 = vmul.f32 %v3732_v53, %v3724_v37  ;;  %v3734_v31 = vpop.eup %3733  ;;  %v3515_v53 = vld [vmem:[%s4663_s11 + $0x38] sm:$0xff] }
 0x3bd   : > { %v1789_v32 = vmul.f32 32.0, %v3734_v31  ;;  %vm1793_vm8 = vweird.f32 %v3734_v31  ;;  %2026 = vmatpush.bf16.msrb.mxu2 %v3510_v49  ;;  %v3536_v49 = vld [vmem:[%s4241_s28 + $0x80] sm:$0xff] }
 0x3be   : > { %v1605_v55 = vpack.c.bf16 %v1601_v54, %v1601_v54  ;;  %v3517_v54 = vld [vmem:[%s4663_s11 + $0x48] sm:$0xff] }
 0x3bf   : > { %v1790_v33 = vsub.f32 1.0, %v1789_v32  ;;  %v3528_v32 = vld [vmem:[%s4241_s28 + $0x40] sm:$0xff] }
 0x3c0   : > { %3204 = vmatmul.msk.bf16.vlgmr.msra.gmra.mxu3 %vm1477_vm6, %v1605_v55  ;;  %v3519_v55 = vld [vmem:[%s4663_s11 + $0x58] sm:$0xff] }
 0x3c1   : > { %v1791_v34 = vmul.f32 %v3734_v31, %v1790_v33  ;;  %2050 = vmatpush.bf16.msra.mxu3 %v3513_v46  ;;  %v3539_v33 = vld [vmem:[%s4241_s28 + $0x98] sm:$0xff] }
 0x3c2   : > { %v3702_v46 = vld [vmem:[%s4222_s2] ss:$0 sm:$0xff] }
 0x3c3   : > { %v1792_v35 = vadd.f32 %v3734_v31, %v1791_v34  ;;  %v3567_v34 = vld [vmem:[%s4241_s28 + $0x178] sm:$0xff] }
 0x3c5   : > { %v4354_v36 = vsel %vm1793_vm8, %v3734_v31, %v1792_v35  ;;  %2051 = vmatpush.bf16.msra.mxu3 %v3512_v50  ;;  %v3558_v31 = vld [vmem:[%s4241_s28 + $0x130] sm:$0xff]  ;;  %v3549_v35 = vld [vmem:[%s4241_s28 + $0xe8] sm:$0xff]  ;;  %v3564_v50 = vld [vmem:[%s4241_s28 + $0x160] sm:$0xff] }
 0x40a   : > { %v1626_v60 = vpop.f32.mrf.mxu0 }
 0x40b   : > { %v1687_v61 = vpack.c.bf16 %v1626_v60, %v1626_v60 }
 0x40d   : > { %3205 = vmatmul.msk.bf16.vlgmr.msra.gmra.mxu0 %vm1477_vm6, %v1687_v61 }
 0x40e   : > { %2075 = vmatpush.bf16.msra.mxu0 %v3515_v53 }
 0x412   : > { %v1628_v62 = vpop.f32.mrf.mxu0  ;;  %2076 = vmatpush.bf16.msra.mxu0 %v3514_v57 }
 0x419   : > { %v1645_v63 = vpop.f32.mrf.mxu1 }
 0x41a   : > { %v1688_v0 = vpack.c.bf16 %v1645_v63, %v1645_v63 }
 0x41c   : > { %3206 = vmatmul.msk.bf16.vlgmr.msrb.gmra.mxu1 %vm1477_vm6, %v1688_v0 }
 0x41d   : > { %2100 = vmatpush.bf16.msrb.mxu1 %v3517_v54 }
 0x421   : > { %v1647_v5 = vpop.f32.mrf.mxu1  ;;  %2101 = vmatpush.bf16.msrb.mxu1 %v3516_v58 }
 0x43b   : > { %v1664_v6 = vpop.f32.mrf.mxu2 }
 0x43c   : > { %v1689_v7 = vpack.c.bf16 %v1664_v6, %v1664_v6  ;;  %v3700_v6 = vld [vmem:[%s4667_s23] ss:$0 sm:$0xff] }
 0x43e   : > { %3207 = vmatmul.msk.bf16.vlgmr.msra.gmra.mxu2 %vm1477_vm6, %v1689_v7 }
 0x43f   : > { %2125 = vmatpush.bf16.msra.mxu2 %v3519_v55  ;;  %v3546_v55 = vld [vmem:[%s4241_s28 + $0xd0] sm:$0xff] }
 0x443   : > { %v1666_v8 = vpop.f32.mrf.mxu2  ;;  %v1683_v9 = vpop.f32.mrf.mxu3  ;;  %2126 = vmatpush.bf16.msra.mxu2 %v3518_v59  ;;  %v3703_v59 = vld [vmem:[%s4222_s2 + $0x1] ss:$0 sm:$0xff] }
 0x444   : > { %v1690_v10 = vpack.c.bf16 %v1683_v9, %v1683_v9  ;;  %v3525_v8 = vld [vmem:[%s4241_s28 + $0x28] sm:$0xff] }
 0x446   : > { %3208 = vmatmul.msk.bf16.vlgmr.msrb.gmra.mxu3 %vm1477_vm6, %v1690_v10 }
 0x447   : > { %2360 = vmatpush.bf16.msrb.mxu3 %v3527_v1  ;;  %v3562_v1 = vld [vmem:[%s4241_s28 + $0x150] sm:$0xff] }
 0x44b   : > { %v1685_v11 = vpop.f32.mrf.mxu3  ;;  %2361 = vmatpush.bf16.msrb.mxu3 %v3526_v3 }
 0x44c   : > { %v3524_v11 = vld [vmem:[%s4241_s28 + $0x20] sm:$0xff] }
 0x44f   : > { %2362 = vmatpush.bf16.msrb.mxu3 %v3525_v8 }
 0x453   : > { %2363 = vmatpush.bf16.msrb.mxu3 %v3524_v11 }
 0x48a   : > { %v1710_v12 = vpop.f32.mrf.mxu0 }
 0x48b   : > { %v1771_v18 = vsel %vm1177_vm5, %v1710_v12, 0.0 }
 0x492   : > { %v1712_v13 = vpop.f32.mrf.mxu0 }
 0x499   : > { %v1729_v14 = vpop.f32.mrf.mxu1 }
 0x49a   : > { %v1772_v17 = vsel %vm1177_vm5, %v1729_v14, 0.0  ;;  %v3535_v14 = vld [vmem:[%s4241_s28 + $0x78] sm:$0xff] }
 0x49b   : > { %v1773_v20 = vadd.f32 %v1772_v17, %v1771_v18  ;;  %v3532_v17 = vld [vmem:[%s4241_s28 + $0x60] sm:$0xff]  ;;  %v3543_v18 = vld [vmem:[%s4241_s28 + $0xb8] sm:$0xff] }
 0x4a1   : > { %v1731_v15 = vpop.f32.mrf.mxu1 }
 0x4a2   : > { %v3533_v15 = vld [vmem:[%s4241_s28 + $0x68] sm:$0xff] }
 0x4c1   : > { %v1748_v16 = vpop.f32.mrf.mxu2 }
 0x4c2   : > { %v1774_v19 = vsel %vm1177_vm5, %v1748_v16, 0.0  ;;  %v3523_v16 = vld [vmem:[%s4241_s28 + $0x18] sm:$0xff] }
 0x4c3   : > { %v1775_v21 = vadd.f32 %v1774_v19, %v1773_v20  ;;  %2364 = vmatpush.bf16.msrb.mxu3 %v3523_v16  ;;  %v3522_v19 = vld [vmem:[%s4241_s28 + $0x10] sm:$0xff]  ;;  %v3531_v20 = vld [vmem:[%s4241_s28 + $0x58] sm:$0xff] }
 0x4c7   : > { %2365 = vmatpush.bf16.msrb.mxu3 %v3522_v19  ;;  %v3706_v19 = vld [vmem:[%s4222_s2 + $0x4] ss:$0 sm:$0xff] }
 0x4c9   : > { %v1750_v22 = vpop.f32.mrf.mxu2  ;;  %v1767_v23 = vpop.f32.mrf.mxu3 }
 0x4ca   : > { %v1776_v25 = vsel %vm1177_vm5, %v1767_v23, 0.0  ;;  %v3521_v22 = vld [vmem:[%s4241_s28 + $0x8] sm:$0xff]  ;;  %v3530_v23 = vld [vmem:[%s4241_s28 + $0x50] sm:$0xff] }
 0x4cb   : > { %v1777_v26 = vadd.f32 %v1776_v25, %v1775_v21  ;;  %v3542_v21 = vld [vmem:[%s4241_s28 + $0xb0] sm:$0xff]  ;;  %2366 = vmatpush.bf16.msrb.mxu3 %v3521_v22  ;;  %v3520_v25 = vld [vmem:[%s4241_s28] sm:$0xff] }
 0x4cd   : > { %v1782_v27 = vadd.f32 %v3698_v24, %v1777_v26  ;;  %v3541_v24 = vld [vmem:[%s4241_s28 + $0xa8] sm:$0xff]  ;;  %v3551_v26 = vld [vmem:[%s4241_s28 + $0xf8] sm:$0xff] }
 0x4cf   : > { %v1785_v28 = vsel %vm1177_vm5, %v1782_v27, 0.0  ;;  %2367 = vmatpush.bf16.msrb.mxu3 %v3520_v25 }
 0x4d0   : > { %1786 = vadd.xlane.f32.xlu2 %v1785_v28  ;;  %v3529_v28 = vld [vmem:[%s4241_s28 + $0x48] sm:$0xff] }
 0x4d1   : > { %v1769_v29 = vpop.f32.mrf.mxu3 }
 0x4d2   : > { %v3540_v29 = vld [vmem:[%s4241_s28 + $0xa0] sm:$0xff] }
 0x543   : > { %v1787_v37 = vpop.xlane.xlu2 %1786 }
 0x544   : > { %v1795_v38 = vmul.f32 %v4354_v36, %v1787_v37  ;;  %v3557_v37 = vld [vmem:[%s4241_s28 + $0x128] sm:$0xff] }
 0x546   : > { %v1796_v39 = vsub.f32 %v1782_v27, %v1795_v38  ;;  %v3559_v27 = vld [vmem:[%s4241_s28 + $0x138] sm:$0xff]  ;;  %v3538_v38 = vld [vmem:[%s4241_s28 + $0x90] sm:$0xff] }
 0x548   : > { %v1797_v40 = vmul.f32 %v1796_v39, %v1796_v39 }
 0x54a   : > { %v1798_v41 = vsel %vm1177_vm5, %v1797_v40, 0.0  ;;  %v3548_v40 = vld [vmem:[%s4241_s28 + $0xe0] sm:$0xff] }
 0x54b   : > { %1799 = vadd.xlane.f32.xlu0 %v1798_v41  ;;  %v3556_v41 = vld [vmem:[%s4241_s28 + $0x120] sm:$0xff] }
 0x5be   : > { %v1800_v51 = vpop.xlane.xlu0 %1799 }
 0x5bf   : > { %v1801_v52 = vmul.f32 %v1800_v51, %v4354_v36 }
 0x5c1   : > { %v1802_v56 = vadd.f32 1e-12, %v1801_v52 }
 0x5c3   : > { %3735 = vrsqrt.f32 %v1802_v56  ;;  %vm1809_vm10 = vweird.f32 %v1802_v56 }
 0x5c9   : > { %v3736_v60 = vpop.eup %3735 }
 0x5ca   : > { %v1804_v61 = vmul.f32 %v3736_v60, %v1802_v56  ;;  %vm1810_vm9 = vweird.f32 %v3736_v60  ;;  %v3554_v56 = vld [vmem:[%s4241_s28 + $0x110] sm:$0xff] }
 0x5cb   : > { %vm1811_vm11 = vmor %vm1809_vm10, %vm1810_vm9 }
 0x5cc   : > { %v1805_v62 = vmul.f32 %v3736_v60, %v1804_v61  ;;  %v3704_v61 = vld [vmem:[%s4222_s2 + $0x2] ss:$0 sm:$0xff] }
 0x5ce   : > { %v1806_v63 = vmul.f32 0.5, %v1805_v62  ;;  %v3545_v62 = vld [vmem:[%s4241_s28 + $0xc8] sm:$0xff] }
 0x5d0   : > { %v1807_v0 = vsub.f32 1.5, %v1806_v63  ;;  %v3553_v63 = vld [vmem:[%s4241_s28 + $0x108] sm:$0xff] }
 0x5d2   : > { %v1808_v2 = vmul.f32 %v3736_v60, %v1807_v0 }
 0x5d4   : > { %v1812_v5 = vsel %vm1811_vm11, %v3736_v60, %v1808_v2  ;;  %v3563_v60 = vld [vmem:[%s4241_s28 + $0x158] sm:$0xff] }
 0x5d5   : > { %v1813_v7 = vmul.f32 %v1812_v5, %v1796_v39  ;;  %v3566_v39 = vld [vmem:[%s4241_s28 + $0x170] sm:$0xff]  ;;  %v3544_v5 = vld [vmem:[%s4241_s28 + $0xc0] sm:$0xff] }
 0x5d7   : > { %v1817_v9 = vmul.f32 %v3699_v4, %v1813_v7 }
 0x5d9   : > { %v1821_v10 = vadd.f32 %v3700_v6, %v1817_v9 }
 0x5db   : > { %v4388_v12 = vadd.f32 %v1821_v10, %v4262_v42  ;;  %v3534_v42 = vld [vmem:[%s4241_s28 + $0x70] sm:$0xff]  ;;  %v3552_v10 = vld [vmem:[%s4241_s28 + $0x100] sm:$0xff] }
 0x5dd   : > { %v1823_v13 = vpack.c.bf16 %v4388_v12, %v4388_v12 }
 0x5df   : > { %3217 = vmatmul.msk.bf16.vlgmr.msrb.gmra.mxu0 %vm1177_vm5, %v1823_v13  ;;  %3229 = vmatmul.msk.bf16.vlgmr.msra.gmra.mxu1 %vm1177_vm5, %v1823_v13 }
 0x5e0   : > { %3238 = vmatmul.msk.bf16.vlgmr.msrb.gmra.mxu2 %vm1177_vm5, %v1823_v13  ;;  %3247 = vmatmul.msk.bf16.vlgmr.msra.gmra.mxu3 %vm1177_vm5, %v1823_v13 }
 0x5e1   : > { %2421 = vmatpush.bf16.msrb.mxu0 %v3535_v14  ;;  %2482 = vmatpush.bf16.msra.mxu1 %v3543_v18  ;;  %v3705_v18 = vld [vmem:[%s4222_s2 + $0x3] ss:$0 sm:$0xff] }
 0x5e2   : > { %2543 = vmatpush.bf16.msrb.mxu2 %v3551_v26  ;;  %2604 = vmatpush.bf16.msra.mxu3 %v3559_v27 }
 0x5e5   : > { %2422 = vmatpush.bf16.msrb.mxu0 %v3534_v42  ;;  %2483 = vmatpush.bf16.msra.mxu1 %v3542_v21 }
 0x5e6   : > { %2544 = vmatpush.bf16.msrb.mxu2 %v3550_v30  ;;  %2605 = vmatpush.bf16.msra.mxu3 %v3558_v31 }
 0x5e9   : > { %2423 = vmatpush.bf16.msrb.mxu0 %v3533_v15  ;;  %2484 = vmatpush.bf16.msra.mxu1 %v3541_v24 }
 0x5ea   : > { %2545 = vmatpush.bf16.msrb.mxu2 %v3549_v35  ;;  %2606 = vmatpush.bf16.msra.mxu3 %v3557_v37  ;;  %v3707_v37 = vld [vmem:[%s4222_s2 + $0x5] ss:$0 sm:$0xff]  ;;  %s4670_s2 = sld [smem:[#allocation19_spill]] }
 0x5ed   : > { %2424 = vmatpush.bf16.msrb.mxu0 %v3532_v17  ;;  %2485 = vmatpush.bf16.msra.mxu1 %v3540_v29 }
 0x5ee   : > { %2546 = vmatpush.bf16.msrb.mxu2 %v3548_v40  ;;  %2607 = vmatpush.bf16.msra.mxu3 %v3556_v41 }
 0x5ef   : > { %3256 = vmatmul.msk.bf16.vlgmr.msra.gmra.mxu0 %vm1177_vm5, %v1823_v13  ;;  %3265 = vmatmul.msk.bf16.vlgmr.msrb.gmra.mxu1 %vm1177_vm5, %v1823_v13 }
 0x5f0   : > { %3274 = vmatmul.msk.bf16.vlgmr.msra.gmra.mxu2 %vm1177_vm5, %v1823_v13  ;;  %v3561_v13 = vld [vmem:[%s4241_s28 + $0x148] sm:$0xff] }
 0x5f1   : > { %2425 = vmatpush.bf16.msrb.mxu0 %v3531_v20  ;;  %2486 = vmatpush.bf16.msra.mxu1 %v3539_v33  ;;  %v3560_v20 = vld [vmem:[%s4241_s28 + $0x140] sm:$0xff] }
 0x5f2   : > { %2547 = vmatpush.bf16.msrb.mxu2 %v3547_v47  ;;  %2608 = vmatpush.bf16.msra.mxu3 %v3555_v48 }
 0x5f5   : > { %2426 = vmatpush.bf16.msrb.mxu0 %v3530_v23  ;;  %2487 = vmatpush.bf16.msra.mxu1 %v3538_v38 }
 0x5f6   : > { %2548 = vmatpush.bf16.msrb.mxu2 %v3546_v55  ;;  %2609 = vmatpush.bf16.msra.mxu3 %v3554_v56 }
 0x5f9   : > { %2427 = vmatpush.bf16.msrb.mxu0 %v3529_v28  ;;  %2488 = vmatpush.bf16.msra.mxu1 %v3537_v43 }
 0x5fa   : > { %2549 = vmatpush.bf16.msrb.mxu2 %v3545_v62  ;;  %2610 = vmatpush.bf16.msra.mxu3 %v3553_v63 }
 0x5fd   : > { %2428 = vmatpush.bf16.msrb.mxu0 %v3528_v32  ;;  %2489 = vmatpush.bf16.msra.mxu1 %v3536_v49 }
 0x5fe   : > { %2550 = vmatpush.bf16.msrb.mxu2 %v3544_v5  ;;  %2611 = vmatpush.bf16.msra.mxu3 %v3552_v10 }
 0x601   : > { %2665 = vmatpush.bf16.msra.mxu0 %v3567_v34 }
 0x605   : > { %2666 = vmatpush.bf16.msra.mxu0 %v3566_v39 }
 0x609   : > { %2667 = vmatpush.bf16.msra.mxu0 %v3565_v44 }
 0x60d   : > { %2668 = vmatpush.bf16.msra.mxu0 %v3564_v50 }
 0x611   : > { %2669 = vmatpush.bf16.msra.mxu0 %v3563_v60 }
 0x615   : > { %2670 = vmatpush.bf16.msra.mxu0 %v3562_v1 }
 0x619   : > { %2671 = vmatpush.bf16.msra.mxu0 %v3561_v13 }
 0x61d   : > { %2672 = vmatpush.bf16.msra.mxu0 %v3560_v20 }
 0x65c   : > { %v1856_v51 = vpop.f32.mrf.mxu0  ;;  %v2003_v52 = vpop.f32.mrf.mxu1 }
 0x65d   : > { %v4439_v53 = vadd.f32 %v3701_v45, %v1856_v51  ;;  %v4441_v54 = vadd.f32 %v3702_v46, %v2003_v52 }
 0x65f   : > { %v2132_v57 = vmul.f32 %v4441_v54, %v4441_v54  ;;  %v1863_v58 = vsel %vm1862_vm12, %v4439_v53, -inf }
 0x660   : > { %1864 = vmax.xlane.f32.xlu1 %v1863_v58 }
 0x661   : > { %v2138_v0 = vmul.f32 %v2132_v57, %v4441_v54 }
 0x663   : > { %v2144_v2 = vmul.f32 0.044715, %v2138_v0  ;;  %v2028_v3 = vpop.f32.mrf.mxu2  ;;  %v2053_v4 = vpop.f32.mrf.mxu3 }
 0x664   : > { %v4457_v6 = vadd.f32 %v3703_v59, %v2028_v3  ;;  %v4459_v7 = vadd.f32 %v3704_v61, %v2053_v4  ;;  %v1858_v8 = vpop.f32.mrf.mxu0  ;;  %v2005_v9 = vpop.f32.mrf.mxu1 }
 0x665   : > { %v2150_v11 = vadd.f32 %v2144_v2, %v4441_v54 }
 0x666   : > { %v2133_v14 = vmul.f32 %v4457_v6, %v4457_v6  ;;  %v2134_v42 = vmul.f32 %v4459_v7, %v4459_v7 }
 0x667   : > { %v2156_v15 = vmul.f32 0.7978846, %v2150_v11 }
 0x668   : > { %v2139_v16 = vmul.f32 %v2133_v14, %v4457_v6  ;;  %v2140_v17 = vmul.f32 %v2134_v42, %v4459_v7 }
 0x669   : > { %3737 = vtanh.f32 %v2156_v15 }
 0x66a   : > { %v2145_v21 = vmul.f32 0.044715, %v2139_v16  ;;  %v2146_v22 = vmul.f32 0.044715, %v2140_v17 }
 0x66b   : > { %v2030_v23 = vpop.f32.mrf.mxu2  ;;  %v2055_v24 = vpop.f32.mrf.mxu3 }
 0x66c   : > { %v2151_v25 = vadd.f32 %v2145_v21, %v4457_v6  ;;  %v2152_v26 = vadd.f32 %v2146_v22, %v4459_v7  ;;  %v2078_v27 = vpop.f32.mrf.mxu0  ;;  %v2103_v28 = vpop.f32.mrf.mxu1  ;;  %v1860_v23 = vlaneseq }
 0x66d   : > { %v2079_v29 = vadd.f32 %v3705_v18, %v2078_v27  ;;  %v2104_v30 = vadd.f32 %v3706_v19, %v2103_v28 }
 0x66e   : > { %v2157_v31 = vmul.f32 0.7978846, %v2151_v25  ;;  %v2158_v32 = vmul.f32 0.7978846, %v2152_v26  ;;  %v4479_v24 = vand.u32 127, %v1860_v23  ;;  %v3924_v23 = vmov 0.0  }
 0x66f   : > { %v3738_v33 = vpop.eup %3737  ;;  %v2135_v34 = vmul.f32 %v2079_v29, %v2079_v29  ;;  %v2136_v35 = vmul.f32 %v2104_v30, %v2104_v30 }
 0x670   : > { %3739 = vtanh.f32 %v2157_v31  ;;  %v2168_v38 = vadd.f32 1.0, %v3738_v33 }
 0x671   : > { %3741 = vtanh.f32 %v2158_v32  ;;  %v2141_v39 = vmul.f32 %v2135_v34, %v2079_v29  ;;  %v2142_v40 = vmul.f32 %v2136_v35, %v2104_v30 }
 0x672   : > { %v2174_v41 = vmul.f32 0.5, %v2168_v38 }
 0x673   : > { %v2147_v43 = vmul.f32 0.044715, %v2141_v39  ;;  %v2148_v44 = vmul.f32 0.044715, %v2142_v40  ;;  %v2128_v45 = vpop.f32.mrf.mxu2 }
 0x674   : > { %v2129_v46 = vadd.f32 %v3707_v37, %v2128_v45  ;;  %v2080_v47 = vpop.f32.mrf.mxu0  ;;  %v2105_v48 = vpop.f32.mrf.mxu1  ;;  %v2180_v49 = vmul.f32 %v2174_v41, %v4441_v54 }
 0x675   : > { %v2153_v50 = vadd.f32 %v2147_v43, %v2079_v29  ;;  %v2154_v51 = vadd.f32 %v2148_v44, %v2104_v30 }
 0x676   : > { %v3740_v52 = vpop.eup %3739  ;;  %v2137_v55 = vmul.f32 %v2129_v46, %v2129_v46  ;;  %v2186_v56 = vpack.c.bf16 %v2180_v49, %v2180_v49 }
 0x677   : > { %v3742_v57 = vpop.eup %3741  ;;  %v2159_v58 = vmul.f32 0.7978846, %v2153_v50  ;;  %v2160_v59 = vmul.f32 0.7978846, %v2154_v51  ;;  %v2169_v60 = vadd.f32 1.0, %v3740_v52 }
 0x678   : > { %v2143_v61 = vmul.f32 %v2137_v55, %v2129_v46  ;;  %2368 = vmatmul.bf16.vlgmr.msrb.gmra.mxu3 %v2186_v56  ;;  %v2170_v62 = vadd.f32 1.0, %v3742_v57 }
 0x679   : > { %3743 = vtanh.f32 %v2159_v58  ;;  %v2175_v63 = vmul.f32 0.5, %v2169_v60 }
 0x67a   : > { %3745 = vtanh.f32 %v2160_v59  ;;  %v2149_v0 = vmul.f32 0.044715, %v2143_v61  ;;  %v2176_v1 = vmul.f32 0.5, %v2170_v62 }
 0x67b   : > { %v2130_v2 = vpop.f32.mrf.mxu2  ;;  %v2181_v54 = vmul.f32 %v2175_v63, %v4457_v6 }
 0x67c   : > { %v2155_v3 = vadd.f32 %v2149_v0, %v2129_v46  ;;  %v2182_v4 = vmul.f32 %v2176_v1, %v4459_v7 }
 0x67d   : > { %v2187_v5 = vpack.c.bf16 %v2181_v54, %v2181_v54 }
 0x67e   : > { %v2161_v8 = vmul.f32 0.7978846, %v2155_v3  ;;  %v2188_v9 = vpack.c.bf16 %v2182_v4, %v2182_v4 }
 0x67f   : > { %v3744_v10 = vpop.eup %3743  ;;  %2429 = vmatmul.bf16.vlgmr.msrb.gmra.mxu0 %v2187_v5  ;;  %v3921_v5 = vmov 2  }
 0x680   : > { %v3746_v11 = vpop.eup %3745  ;;  %3747 = vtanh.f32 %v2161_v8  ;;  %2490 = vmatmul.bf16.vlgmr.msra.gmra.mxu1 %v2188_v9  ;;  %v2171_v13 = vadd.f32 1.0, %v3744_v10  ;;  %3681 = vset.pattern.permute.xlu0 %v3921_v5  ;;  %v3922_v8 = vmov 1   ;;  %v3923_v9 = vmov 0  }
 0x681   : > { %v2172_v14 = vadd.f32 1.0, %v3746_v11  ;;  %3680 = vset.pattern.permute.xlu2 %v3922_v8  ;;  %3679 = vset.pattern.permute.xlu1 %v3923_v9 }
 0x682   : > { %v2177_v42 = vmul.f32 0.5, %v2171_v13 }
 0x683   : > { %v2178_v15 = vmul.f32 0.5, %v2172_v14 }
 0x684   : > { %v2183_v16 = vmul.f32 %v2177_v42, %v2079_v29 }
 0x685   : > { %v2184_v17 = vmul.f32 %v2178_v15, %v2104_v30 }
 0x686   : > { %v3748_v18 = vpop.eup %3747  ;;  %v2189_v19 = vpack.c.bf16 %v2183_v16, %v2183_v16 }
 0x687   : > { %v2190_v6 = vpack.c.bf16 %v2184_v17, %v2184_v17  ;;  %v2173_v20 = vadd.f32 1.0, %v3748_v18 }
 0x688   : > { %2551 = vmatmul.bf16.vlgmr.msrb.gmra.mxu2 %v2189_v19 }
 0x689   : > { %2612 = vmatmul.bf16.vlgmr.msra.gmra.mxu3 %v2190_v6  ;;  %v2179_v7 = vmul.f32 0.5, %v2173_v20 }
 0x68b   : > { %v2185_v21 = vmul.f32 %v2179_v7, %v2129_v46 }
 0x68d   : > { %v2191_v22 = vpack.c.bf16 %v2185_v21, %v2185_v21 }
 0x68f   : > { %2673 = vmatmul.bf16.vlgmr.msra.gmra.mxu0 %v2191_v22 }
 0x6d3   : > { %v1865_v25 = vpop.xlane.xlu1 %1864 }
 0x6d4   : > { %vm1866_vm13 = vcmp.eq.f32.partialorder %v4439_v53, %v1865_v25 }
 0x6d5   : > { %v1867_v26 = vsel %vm1866_vm13, %v4479_v24, 6 }
 0x6d6   : > { %v1868_v27 = vsel %vm1862_vm12, %v1867_v26, 2147483647 }
 0x6d7   : > { %v1870_v28 = vshra.s32 %v1868_v27, 16  ;;  %v1869_v44 = vand.u32 65535, %v1868_v27 }
 0x6d9   : > { %v1872_v29 = vcvt.s32.f32 %v1870_v28  ;;  %v1871_v46 = vcvt.s32.f32 %v1869_v44  ;;  %v3709_v44 = vld [vmem:[%s4227_s13 + $0x1] ss:$0 sm:$0xff] }
 0x6db   : > { %1873 = vmin.xlane.f32.xlu2 %v1872_v29 }
 0x6fb   : > { %v4484_v30 = vpop.f32.mrf.mxu3 }
 0x6fc   : > { %v4486_v31 = vpop.f32.mrf.mxu0 }
 0x6fd   : > { %v4488_v32 = vpop.f32.mrf.mxu1 }
 0x703   : > { %v2371_v33 = vpop.f32.mrf.mxu3 }
 0x704   : > { %v2432_v34 = vpop.f32.mrf.mxu0  ;;  %v3925_v33 = vmov 3  }
 0x705   : > { %v2493_v35 = vpop.f32.mrf.mxu1  ;;  %v3926_v34 = vmov 5  }
 0x706   : > { %v3927_v35 = vmov 4  }
 0x70b   : > { %v4490_v37 = vpop.f32.mrf.mxu2 }
 0x70c   : > { %v4492_v38 = vpop.f32.mrf.mxu3  ;;  %v4494_v39 = vpop.f32.mrf.mxu0 }
 0x713   : > { %v2554_v40 = vpop.f32.mrf.mxu2 }
 0x714   : > { %v2615_v41 = vpop.f32.mrf.mxu3  ;;  %v2676_v43 = vpop.f32.mrf.mxu0  ;;  %v3568_v40 = vld [vmem:[%s4670_s2] sm:$0xff] }
 0x715   : > { %v3708_v43 = vld [vmem:[%s4227_s13] ss:$0 sm:$0xff] }
 0x74e   : > { %v1874_v45 = vpop.xlane.xlu2 %1873 }
 0x74f   : > { %vm1875_vm14 = vcmp.eq.f32.partialorder %v1872_v29, %v1874_v45  ;;  %v1880_v48 = vcvt.f32.s32 %v1874_v45  ;;  %v3710_v45 = vld [vmem:[%s4227_s13 + $0x2] ss:$0 sm:$0xff] }
 0x750   : > { %v1876_v47 = vsel %vm1875_vm14, %v1871_v46, inf  ;;  %v2370_v46 = vadd.f32 %v3708_v43, %v4484_v30 }
 0x751   : > { %1877 = vmin.xlane.f32.xlu0 %v1876_v47  ;;  %v1881_v50 = vshll.u32 %v1880_v48, 16  ;;  %v2431_v47 = vadd.f32 %v3709_v44, %v4486_v31  ;;  %v3711_v48 = vld [vmem:[%s4227_s13 + $0x3] ss:$0 sm:$0xff] }
 0x7c4   : > { %v1878_v49 = vpop.xlane.xlu0 %1877 }
 0x7c5   : > { %v1879_v51 = vcvt.f32.s32 %v1878_v49 }
 0x7c7   : > { %v1882_v52 = vadd.s32 %v1881_v50, %v1879_v51 }
 0x7c9   : > { %vm1883_vm15 = vcmp.eq.s32.totalorder %v4479_v24, %v1882_v52  ;;  %v2492_v52 = vadd.f32 %v3710_v45, %v4488_v32 }
 0x7ca   : > { %v1884_v55 = vsel %vm1883_vm15, -1e+30, %v4439_v53 }
 0x7cb   : > { %v1885_v56 = vsel %vm1862_vm12, %v1884_v55, -inf }
 0x7cc   : > { %1886 = vmax.xlane.f32.xlu1 %v1885_v56 }
 0x83f   : > { %v1887_v57 = vpop.xlane.xlu1 %1886 }
 0x840   : > { %vm1888_vm0 = vcmp.eq.f32.partialorder %v1884_v55, %v1887_v57  ;;  %v1906_v2 = vsub.f32 %v1887_v57, %v1865_v25  ;;  %v3219_v25 = vsel %vm1883_vm15, 1.0, %v3924_v23  ;;  %v2553_v57 = vadd.f32 %v3711_v48, %v4490_v37  ;;  %v3714_v37 = vld [vmem:[%s4672_s6] ss:$0 sm:$0xff] }
 0x841   : > { %v1889_v58 = vsel %vm1888_vm0, %v4479_v24, 6 }
 0x842   : > { %v1890_v59 = vsel %vm1862_vm12, %v1889_v58, 2147483647  ;;  %v3218_v53 = vmul.f32 -1.442695, %v1906_v2 }
 0x843   : > { %v1892_v60 = vshra.s32 %v1890_v59, 16  ;;  %v1891_v62 = vand.u32 65535, %v1890_v59 }
 0x844   : > { %3749 = vpow2.f32 %v3218_v53 }
 0x845   : > { %v1894_v61 = vcvt.s32.f32 %v1892_v60  ;;  %v1893_v0 = vcvt.s32.f32 %v1891_v62  ;;  %v3712_v60 = vld [vmem:[%s4227_s13 + $0x4] ss:$0 sm:$0xff] }
 0x846   : > { %v2614_v31 = vadd.f32 %v3712_v60, %v4492_v38 }
 0x847   : > { %1895 = vmin.xlane.f32.xlu2 %v1894_v61 }
 0x84a   : > { %v3750_v54 = vpop.eup %3749 }
 0x84b   : > { %v1910_v3 = vadd.f32 1.0, %v3750_v54 }
 0x84d   : > { %3751 = vrcp.f32 %v1910_v3  ;;  %v1922_v42 = vand.u32 2147483648, %v1910_v3  ;;  %vm1916_vm3 = vweird.f32 %v1910_v3  ;;  %v1920_v15 = vand.u32 2147483647, %v1910_v3 }
 0x84f   : > { %v1923_v18 = vor.u32 1.1754944e-38, %v1922_v42  ;;  %vm1921_vm6 = vcmp.eq.f32.partialorder %v1920_v15, 8.507059e+37 }
 0x853   : > { %v3752_v4 = vpop.eup %3751 }
 0x854   : > { %v1912_v10 = vmul.f32 %v3752_v4, %v1910_v3  ;;  %vm1917_vm2 = vweird.f32 %v3752_v4 }
 0x855   : > { %vm1918_vm4 = vmor %vm1916_vm3, %vm1917_vm2 }
 0x856   : > { %v1913_v11 = vsub.f32 1.0, %v1912_v10 }
 0x858   : > { %v1914_v13 = vmul.f32 %v3752_v4, %v1913_v11 }
 0x85a   : > { %v1915_v14 = vadd.f32 %v3752_v4, %v1914_v13 }
 0x85c   : > { %v1919_v17 = vsel %vm1918_vm4, %v3752_v4, %v1915_v14 }
 0x85d   : > { %v1924_v19 = vsel %vm1921_vm6, %v1923_v18, %v1919_v17 }
 0x85e   : > { %v1926_v21 = vsub.f32 1.0, %v1924_v19 }
 0x860   : > { %v1929_v27 = vmul.f32 %v3219_v25, %v1926_v21  ;;  %v3715_v21 = vld [vmem:[%s1005_s22] ss:$0 sm:$0xff] }
 0x8ba   : > { %v1896_v63 = vpop.xlane.xlu2 %1895 }
 0x8bb   : > { %vm1897_vm1 = vcmp.eq.f32.partialorder %v1894_v61, %v1896_v63  ;;  %v1902_v16 = vcvt.f32.s32 %v1896_v63  ;;  %v3713_v63 = vld [vmem:[%s4227_s13 + $0x5] ss:$0 sm:$0xff] }
 0x8bc   : > { %v1898_v1 = vsel %vm1897_vm1, %v1893_v0, inf  ;;  %v2675_v2 = vadd.f32 %v3713_v63, %v4494_v39 }
 0x8bd   : > { %1899 = vmin.xlane.f32.xlu0 %v1898_v1  ;;  %v1903_v20 = vshll.u32 %v1902_v16, 16 }
 0x930   : > { %v1900_v6 = vpop.xlane.xlu0 %1899 }
 0x931   : > { %v1901_v7 = vcvt.f32.s32 %v1900_v6 }
 0x933   : > { %v1904_v22 = vadd.s32 %v1903_v20, %v1901_v7 }
 0x935   : > { %vm1905_vm7 = vcmp.eq.s32.totalorder %v4479_v24, %v1904_v22  ;;  %v3569_v24 = vld [vmem:[%s4670_s2 + $0x8] sm:$0xff] }
 0x936   : > { %v3220_v26 = vsel %vm1905_vm7, 1.0, %v3924_v23  ;;  %2745 = vmatpush.bf16.msrb.mxu1 %v3569_v24 }
 0x937   : > { %v1932_v28 = vmul.f32 %v3220_v26, %v1924_v19 }
 0x939   : > { %v1933_v29 = vadd.f32 %v1932_v28, %v1929_v27 }
 0x93a   : > { %2746 = vmatpush.bf16.msrb.mxu1 %v3568_v40 }
 0x93b   : > { %2692 = vperm.xlu0 %3681, %v1933_v29   ;;  %2686 = vperm.xlu2 %3680, %v1933_v29  }
 0x93c   : > { %2680 = vperm.xlu1 %3679, %v1933_v29  }
 0x943   : > { %3682 = vset.pattern.permute.xlu2 %v3925_v33  ;;  %3685 = vset.pattern.permute.xlu0 %v3926_v34 }
 0x944   : > { %3683 = vset.pattern.permute.xlu1 %v3927_v35  ;;  %2698 = vperm.xlu2 %3682, %v1933_v29  }
 0x945   : > { %2704 = vperm.xlu1 %3683, %v1933_v29  }
 0x94c   : > { %3684 = vset.pattern.permute.xlu2 %v3926_v34 }
 0x94d   : > { %2710 = vperm.xlu2 %3684, %v1933_v29  }
 0x995   : > { %v2687_v41 = vpop.permute.xlu2 %2686 }
 0x996   : > { %v2689_v55 = vmul.f32 %v2687_v41, %v2431_v47 }
 0x99e   : > { %v2699_v49 = vpop.permute.xlu2 %2698 }
 0x99f   : > { %v2701_v61 = vmul.f32 %v2699_v49, %v2553_v57 }
 0x9a7   : > { %v2711_v0 = vpop.permute.xlu2 %2710 }
 0x9a8   : > { %v2713_v32 = vmul.f32 %v2711_v0, %v2675_v2 }
 0x9ad   : > { %v2693_v50 = vpop.permute.xlu0 %2692 }
 0x9ae   : > { %v2681_v51 = vpop.permute.xlu1 %2680  ;;  %v2695_v58 = vmul.f32 %v2693_v50, %v2492_v52 }
 0x9af   : > { %v2683_v56 = vmul.f32 %v2681_v51, %v2370_v46 }
 0x9b1   : > { %v2690_v59 = vadd.f32 %v2689_v55, %v2683_v56 }
 0x9b3   : > { %v2696_v62 = vadd.f32 %v2695_v58, %v2690_v59 }
 0x9b5   : > { %v2702_v30 = vadd.f32 %v2701_v61, %v2696_v62 }
 0x9b7   : > { %v2705_v1 = vpop.permute.xlu1 %2704 }
 0x9b8   : > { %v2707_v53 = vmul.f32 %v2705_v1, %v2614_v31 }
 0x9ba   : > { %v2708_v54 = vadd.f32 %v2707_v53, %v2702_v30 }
 0x9bc   : > { %v2714_v3 = vadd.f32 %v2713_v32, %v2708_v54 }
 0x9be   : > { %v2715_v4 = vpack.c.bf16 %v2714_v3, %v2714_v3 }
 0x9c0   : > { %3475 = vmatmul.msk.bf16.vlgmr.msrb.gmra.mxu1 %vm1177_vm5, %v2715_v4 }
 0xa3d   : > { %v2748_v5 = vpop.f32.mrf.mxu1 }
 0xa3e   : > { %v2749_v8 = vadd.f32 %v3714_v37, %v2748_v5 }
 0xa40   : > { %v2754_v38 = vsel %vm1177_vm5, %v2749_v8, 0.0 }
 0xa41   : > { %2755 = vadd.xlane.f32.xlu1 %v2754_v38 }
 0xa45   : > { %v2750_v9 = vpop.f32.mrf.mxu1 }
 0xab4   : > { %v2756_v10 = vpop.xlane.xlu1 %2755 }
 0xab5   : > { %v2757_v39 = vmul.f32 %v2756_v10, %v4354_v36 }
 0xab7   : > { %v2758_v11 = vsub.f32 %v2749_v8, %v2757_v39 }
 0xab9   : > { %v2759_v13 = vmul.f32 %v2758_v11, %v2758_v11 }
 0xabb   : > { %v2760_v14 = vsel %vm1177_vm5, %v2759_v13, 0.0 }
 0xabc   : > { %2761 = vadd.xlane.f32.xlu2 %v2760_v14 }
 0xb2f   : > { %v2762_v42 = vpop.xlane.xlu2 %2761 }
 0xb30   : > { %v2763_v15 = vmul.f32 %v2762_v42, %v4354_v36  ;;  %v3716_v36 = vld [vmem:[%s1008_s10] ss:$0 sm:$0xff] }
 0xb32   : > { %v2764_v16 = vadd.f32 1e-12, %v2763_v15 }
 0xb34   : > { %3753 = vrsqrt.f32 %v2764_v16  ;;  %vm2771_vm9 = vweird.f32 %v2764_v16 }
 0xb3a   : > { %v3754_v17 = vpop.eup %3753 }
 0xb3b   : > { %v2766_v18 = vmul.f32 %v3754_v17, %v2764_v16  ;;  %vm2772_vm8 = vweird.f32 %v3754_v17 }
 0xb3c   : > { %vm2773_vm10 = vmor %vm2771_vm9, %vm2772_vm8 }
 0xb3d   : > { %v2767_v19 = vmul.f32 %v3754_v17, %v2766_v18 }
 0xb3f   : > { %v2768_v6 = vmul.f32 0.5, %v2767_v19 }
 0xb41   : > { %v2769_v20 = vsub.f32 1.5, %v2768_v6 }
 0xb43   : > { %v2770_v7 = vmul.f32 %v3754_v17, %v2769_v20 }
 0xb45   : > { %v2774_v22 = vsel %vm2773_vm10, %v3754_v17, %v2770_v7 }
 0xb46   : > { %v2775_v23 = vmul.f32 %v2774_v22, %v2758_v11 }
 0xb48   : > { %v2779_v25 = vmul.f32 %v3715_v21, %v2775_v23 }
 0xb4a   : > { %v2783_v26 = vadd.f32 %v3716_v36, %v2779_v25  ;;  %2789 = sbr.rel (%p3476_p3) target bundleno = 2898 (0xb52), region = 124 }
 0xb4c   : > { %v2784_v27 = vadd.f32 %v2783_v26, %v4388_v12 }
 0xb4e   : > { %2785 = vst.msk [vmem:[#allocation2] sm:$0xff] %vm1177_vm5, %v2784_v27 }
 0xb4f   : > { %v2790_v28 = vpack.c.bf16 %v2784_v27, %v2784_v27  ;;  %vm2791_vm11 = vcmask 257024  }
 0xb51   : > { %2792 = vst.msk [vmem:[%s1012_s15] sm:$0xf] %vm2791_vm11, %v2790_v28 }
 0xb52 PF: > { %s4676_s10 = sld [smem:[#allocation14_spill]] }
 0xb53   : > { %s4677_s2 = sld [smem:[#allocation10_spill]] }
 0xb54   : > { %s4678_s25 = sld [smem:[#allocation11_spill]] }
 0xb55   : > { %s4679_s26 = sld [smem:[#allocation17_spill]] }
 0xb56   : > { %s4680_s27 = sld [smem:[#allocation12_spill]] }
 0xb57   : > { %s4681_s3 = sld [smem:[#allocation13_spill]] }
 0xb58   : > { %s37_s0 = sadd.s32 1, %s4676_s10   ;;  %s4682_s28 = sld [smem:[#allocation15_spill]] }
 0xb59   : > { %p34_p4 = scmp.ge.s32.totalorder %s37_s0, 6   ;;  %s4683_s29 = sld [smem:[#allocation16_spill]] }
 0xb5b   :  { %36 = sbr.rel (!%p34_p4) target bundleno = 30 (0x1e), region = 221 }
 0xb60   :  { %2812 = vsyncpa [#allocation4], 1 }
 0xb61   :  { %2814 = vsyncpa [#allocation4 + $0x1], 1 }
 0xb62   :  { %2815 = vsyncpa [#allocation6], 1 }
 0xb63   :  { %2817 = vsyncpa [#allocation6 + $0x1], 1 }

</bundles_post_ra>
